<compile_context>
chip_gen: v7x
topology: tpu7x:2x2x1
jax: 0.10.0
libtpu: 0.0.40
codegen_flags: <defaults>
</compile_context>

<pallas_src>
import jax
import jax.numpy as jnp
from jax.experimental import pallas as pl
from jax.experimental.pallas import tpu as pltpu

NUM_EMBEDDING = 64     # C
BLOCK_SIZE = 32        # max sequence length (tril buffer size in PyTorch)
NUM_HEADS = 4
HEAD_SIZE = NUM_EMBEDDING // NUM_HEADS  # 16
DROPOUT = 0.0          # dropout p = 0.0 -> exact identity
# TODO(synk): dropout with p > 0.0 would need pltpu.prng_* inside the kernel;
#             with p = 0.0 it is an exact no-op, matching the PyTorch module.


def _mha_kernel(x_ref, wqkv_ref, wp_ref, bp_ref, o_ref):
    # x_ref:    (Bb, T, C)   block of Bb batch elements
    # wqkv_ref: (C, 3*C)     fused [Wq | Wk | Wv], each (C, H*Hs)
    # wp_ref:   (C, C)       output projection (pre-transposed)
    # bp_ref:   (1, C)       output projection bias
    # o_ref:    (Bb, T, C)
    Bb, T, C = x_ref.shape
    H, Hs = NUM_HEADS, HEAD_SIZE
    # NOTE: PyTorch code scales by C**-0.5 (embedding dim 64), not head_size**-0.5.
    scale = C ** (-0.5)

    # bf16 MXU operands, f32 accumulation (fast MXU path on v6e/v7x).
    x2 = x_ref[...].reshape(Bb * T, C).astype(jnp.bfloat16)
    wqkv = wqkv_ref[...].astype(jnp.bfloat16)
    wp = wp_ref[...].astype(jnp.bfloat16)

    # Single fused QKV projection: (Bb*T, 64) @ (64, 192) -> (Bb*T, 192), lane-dense.
    qkv = jnp.dot(x2, wqkv, preferred_element_type=jnp.float32)

    # Additive causal bias (finite -> no NaN even for fully-masked padded rows).
    row = jax.lax.broadcasted_iota(jnp.int32, (T, T), 0)
    col = jax.lax.broadcasted_iota(jnp.int32, (T, T), 1)
    bias = jnp.where(col <= row, 0.0, -1e30).astype(jnp.float32)  # (T, T)

    # Head-concat + projection fused as a sum of per-head projections:
    #   concat_h(o_h) @ Wp == sum_h  o_h @ Wp[h*Hs:(h+1)*Hs, :]
    acc = jnp.zeros((Bb * T, C), jnp.float32)
    for h in range(H):  # static unroll over 4 heads (no concatenate anywhere)
        q = qkv[:, h * Hs:(h + 1) * Hs].reshape(Bb, T, Hs)
        k = qkv[:, C + h * Hs:C + (h + 1) * Hs].reshape(Bb, T, Hs)
        v = qkv[:, 2 * C + h * Hs:2 * C + (h + 1) * Hs].reshape(Bb, T, Hs)

        # Batched attention scores over the Bb block: (Bb, T, T)
        s = jnp.einsum('btd,bsd->bts',
                       q.astype(jnp.bfloat16), k.astype(jnp.bfloat16),
                       preferred_element_type=jnp.float32) * scale
        s = s + bias  # broadcast (T, T) over Bb

        # Numerically-stable softmax; reciprocal on the EUP slot.
        m = jnp.max(s, axis=-1, keepdims=True)
        e = jnp.exp(s - m)
        denom = jnp.sum(e, axis=-1, keepdims=True)
        p = e * pl.reciprocal(denom, approx=True)

        o_h = jnp.einsum('bts,bsd->btd',
                         p.astype(jnp.bfloat16), v.astype(jnp.bfloat16),
                         preferred_element_type=jnp.float32)  # (Bb, T, Hs)

        acc = acc + jnp.dot(o_h.reshape(Bb * T, Hs).astype(jnp.bfloat16),
                            wp[h * Hs:(h + 1) * Hs, :],
                            preferred_element_type=jnp.float32)

    proj = acc + bp_ref[...].astype(jnp.float32)  # (1, C) broadcasts over rows
    # TODO(synk): if v5e profiling shows vst.msk partial stores, present the output
    #             lane-dense as (B, T*C) wrapper-side instead of (B, T, C).
    o_ref[...] = proj.reshape(Bb, T, C).astype(o_ref.dtype)


def _pick_batch_block(B, max_block=16):
    """Largest Bb <= max_block dividing B while keeping >= 2 grid steps (v7x megacore)."""
    if B <= 1:
        return B
    best = 1
    for bb in range(1, min(B, max_block) + 1):
        if B % bb == 0 and B // bb >= 2:
            best = bb
    return best


def multi_head_attention(x, wqkv, wp, bp, *, batch_block=None):
    """x: (B, T, C); wqkv: (C, 3*C); wp: (C, C); bp: (1, C)."""
    B, T, C = x.shape
    if batch_block is None:
        batch_block = _pick_batch_block(B)
    assert B % batch_block == 0, "batch_block must divide B"
    grid = (B // batch_block,)

    return pl.pallas_call(
        _mha_kernel,
        out_shape=jax.ShapeDtypeStruct((B, T, C), x.dtype),
        grid=grid,
        in_specs=[
            pl.BlockSpec((batch_block, T, C), lambda b: (b, 0, 0)),  # x block
            pl.BlockSpec(wqkv.shape, lambda b: (0, 0)),              # fused Wqkv (resident)
            pl.BlockSpec(wp.shape, lambda b: (0, 0)),                # Wp (resident)
            pl.BlockSpec(bp.shape, lambda b: (0, 0)),                # bias (resident)
        ],
        out_specs=pl.BlockSpec((batch_block, T, C), lambda b: (b, 0, 0)),
        compiler_params=pltpu.CompilerParams(
            dimension_semantics=("parallel",)),
    )(x, wqkv, wp, bp)


def fuse_qkv_weights(wq, wk, wv):
    """(H, C, Hs) x3  ->  (C, 3*H*Hs) ordered [Q heads | K heads | V heads]."""
    H, C, Hs = wq.shape

    def flat(w):
        return jnp.transpose(w, (1, 0, 2)).reshape(C, H * Hs)

    return jnp.concatenate([flat(wq), flat(wk), flat(wv)], axis=-1)


def _reference(x, wq, wk, wv, wp, bp):
    """Plain-JAX f32 reference mirroring the PyTorch forward."""
    B, T, C = x.shape
    scale = C ** (-0.5)
    tril = jnp.tril(jnp.ones((T, T), dtype=bool))
    outs = []
    for h in range(NUM_HEADS):
        q = x @ wq[h]
        k = x @ wk[h]
        v = x @ wv[h]
        w = (q @ jnp.swapaxes(k, -1, -2)) * scale
        w = jnp.where(tril, w, -jnp.inf)
        w = jax.nn.softmax(w, axis=-1)
        outs.append(w @ v)
    out = jnp.concatenate(outs, axis=-1)
    return out @ wp + bp


if __name__ == "__main__":
    key = jax.random.PRNGKey(0)
    k_x, k_q, k_k, k_v, k_p, k_b = jax.random.split(key, 6)

    B, T, C = 8, 8, NUM_EMBEDDING  # T <= block_size (32); B=8 -> Bb=4, 2-step parallel grid

    x = jax.random.normal(k_x, (B, T, C), dtype=jnp.float32)

    # Deterministic synthetic parameters (shapes implied by the PyTorch module),
    # stored pre-transposed for x @ W usage.
    wq = 0.05 * jax.random.normal(k_q, (NUM_HEADS, C, HEAD_SIZE), dtype=jnp.float32)
    wk = 0.05 * jax.random.normal(k_k, (NUM_HEADS, C, HEAD_SIZE), dtype=jnp.float32)
    wv = 0.05 * jax.random.normal(k_v, (NUM_HEADS, C, HEAD_SIZE), dtype=jnp.float32)
    wp = 0.05 * jax.random.normal(k_p, (C, C), dtype=jnp.float32)
    bp = 0.05 * jax.random.normal(k_b, (1, C), dtype=jnp.float32)

    wqkv = fuse_qkv_weights(wq, wk, wv)

    out = multi_head_attention(x, wqkv, wp, bp)
    out = jax.block_until_ready(out)

    ref = _reference(x, wq, wk, wv, wp, bp)
    assert out.shape == (B, T, C)
    # Tolerance reflects bf16 MXU operands + approx-reciprocal softmax inside the kernel.
    assert jnp.allclose(out, ref, atol=2e-2, rtol=2e-2), "mismatch vs reference"

    print("KERNEL_OK")
</pallas_src>

<mosaic_0001>
module attributes {stable_mosaic.version = 11 : i64} {
  func.func @_mha_kernel(%arg0: i32, %arg1: memref<4x8x64xf32, #tpu.memory_space<vmem>>, %arg2: memref<64x192xf32, #tpu.memory_space<vmem>>, %arg3: memref<64x64xf32, #tpu.memory_space<vmem>>, %arg4: memref<1x64xf32, #tpu.memory_space<vmem>>, %arg5: memref<4x8x64xf32, #tpu.memory_space<vmem>>) attributes {dimension_semantics = [#tpu.dimension_semantics<parallel>], iteration_bounds = array<i64: 2>, scalar_prefetch = 0 : i64, scratch_operands = 0 : i64, tpu.core_type = #tpu.core_type<tc>, window_params = [{transform_indices = @transform_0, window_bounds = array<i64: 4, 8, 64>}, {pipeline_mode = #tpu.pipeline_mode<synchronous>, transform_indices = @transform_1, window_bounds = array<i64: 64, 192>}, {pipeline_mode = #tpu.pipeline_mode<synchronous>, transform_indices = @transform_2, window_bounds = array<i64: 64, 64>}, {pipeline_mode = #tpu.pipeline_mode<synchronous>, transform_indices = @transform_3, window_bounds = array<i64: 1, 64>}, {transform_indices = @transform_4, window_bounds = array<i64: 4, 8, 64>}]} {
    %c0 = arith.constant 0 : index
    %c0_0 = arith.constant 0 : index
    %c0_1 = arith.constant 0 : index
    %0 = vector.load %arg1[%c0, %c0_0, %c0_1] : memref<4x8x64xf32, #tpu.memory_space<vmem>>, vector<4x8x64xf32>
    %1 = vector.shape_cast %0 : vector<4x8x64xf32> to vector<32x64xf32>
    %2 = arith.truncf %1 : vector<32x64xf32> to vector<32x64xbf16>
    %c0_2 = arith.constant 0 : index
    %c0_3 = arith.constant 0 : index
    %3 = vector.load %arg2[%c0_2, %c0_3] : memref<64x192xf32, #tpu.memory_space<vmem>>, vector<64x192xf32>
    %4 = arith.truncf %3 : vector<64x192xf32> to vector<64x192xbf16>
    %c0_4 = arith.constant 0 : index
    %c0_5 = arith.constant 0 : index
    %5 = vector.load %arg3[%c0_4, %c0_5] : memref<64x64xf32, #tpu.memory_space<vmem>>, vector<64x64xf32>
    %6 = arith.truncf %5 : vector<64x64xf32> to vector<64x64xbf16>
    %cst = arith.constant dense<0.000000e+00> : vector<32x192xf32>
    %7 = tpu.matmul %2, %4, %cst {dimension_numbers = #tpu.dot_dimension_numbers<[1], [0], [0], [1], [0, 0, 1, 1], [], []>} : vector<32x64xbf16>, vector<64x192xbf16>, vector<32x192xf32> -> vector<32x192xf32>
    %8 = tpu.iota {dimensions = array<i32: 0>} : vector<8x8xi32>
    %9 = tpu.iota {dimensions = array<i32: 1>} : vector<8x8xi32>
    %10 = arith.cmpi sle, %9, %8 : vector<8x8xi32>
    %cst_6 = arith.constant 0.000000e+00 : f32
    %cst_7 = arith.constant -1.000000e+30 : f32
    %11 = vector.broadcast %cst_6 : f32 to vector<8x8xf32>
    %12 = vector.broadcast %cst_7 : f32 to vector<8x8xf32>
    %13 = arith.select %10, %11, %12 : vector<8x8xi1>, vector<8x8xf32>
    %cst_8 = arith.constant 0.000000e+00 : f32
    %14 = vector.broadcast %cst_8 : f32 to vector<32x64xf32>
    %15 = vector.extract_strided_slice %7 {offsets = [0, 0], sizes = [32, 16], strides = [1, 1]} : vector<32x192xf32> to vector<32x16xf32>
    %16 = vector.shape_cast %15 : vector<32x16xf32> to vector<4x8x16xf32>
    %17 = vector.extract_strided_slice %7 {offsets = [0, 64], sizes = [32, 16], strides = [1, 1]} : vector<32x192xf32> to vector<32x16xf32>
    %18 = vector.shape_cast %17 : vector<32x16xf32> to vector<4x8x16xf32>
    %19 = vector.extract_strided_slice %7 {offsets = [0, 128], sizes = [32, 16], strides = [1, 1]} : vector<32x192xf32> to vector<32x16xf32>
    %20 = vector.shape_cast %19 : vector<32x16xf32> to vector<4x8x16xf32>
    %21 = arith.truncf %16 : vector<4x8x16xf32> to vector<4x8x16xbf16>
    %22 = arith.truncf %18 : vector<4x8x16xf32> to vector<4x8x16xbf16>
    "tpu.trace_start"() <{level = 10 : i32, message = "btd,bsd->bts"}> : () -> ()
    %cst_9 = arith.constant dense<0.000000e+00> : vector<4x8x8xf32>
    %23 = tpu.matmul %21, %22, %cst_9 {dimension_numbers = #tpu.dot_dimension_numbers<[2], [2], [1], [1], [0, 0, 0, 1, 1, 1], [0], [0]>} : vector<4x8x16xbf16>, vector<4x8x16xbf16>, vector<4x8x8xf32> -> vector<4x8x8xf32>
    "tpu.trace_stop"() : () -> ()
    %cst_10 = arith.constant 1.250000e-01 : f32
    %24 = vector.broadcast %cst_10 : f32 to vector<4x8x8xf32>
    %25 = arith.mulf %23, %24 : vector<4x8x8xf32>
    %26 = vector.shape_cast %13 : vector<8x8xf32> to vector<1x8x8xf32>
    %27 = vector.broadcast %26 : vector<1x8x8xf32> to vector<4x8x8xf32>
    %28 = arith.addf %25, %27 : vector<4x8x8xf32>
    %cst_11 = arith.constant dense<0xFF800000> : vector<4x8xf32>
    %29 = vector.multi_reduction <maximumf>, %28, %cst_11 [2] : vector<4x8x8xf32> to vector<4x8xf32>
    %30 = vector.shape_cast %29 : vector<4x8xf32> to vector<4x8x1xf32>
    %31 = vector.broadcast %30 : vector<4x8x1xf32> to vector<4x8x8xf32>
    %32 = arith.subf %28, %31 : vector<4x8x8xf32>
    %33 = math.exp %32 : vector<4x8x8xf32>
    %cst_12 = arith.constant dense<0.000000e+00> : vector<4x8xf32>
    %34 = vector.multi_reduction <add>, %33, %cst_12 [2] : vector<4x8x8xf32> to vector<4x8xf32>
    %35 = vector.shape_cast %34 : vector<4x8xf32> to vector<4x8x1xf32>
    %36 = tpu.reciprocal %35 {approx = true} : vector<4x8x1xf32> -> vector<4x8x1xf32>
    %37 = vector.broadcast %36 : vector<4x8x1xf32> to vector<4x8x8xf32>
    %38 = arith.mulf %33, %37 : vector<4x8x8xf32>
    %39 = arith.truncf %38 : vector<4x8x8xf32> to vector<4x8x8xbf16>
    %40 = arith.truncf %20 : vector<4x8x16xf32> to vector<4x8x16xbf16>
    "tpu.trace_start"() <{level = 10 : i32, message = "bts,bsd->btd"}> : () -> ()
    %cst_13 = arith.constant dense<0.000000e+00> : vector<4x8x16xf32>
    %41 = tpu.matmul %39, %40, %cst_13 {dimension_numbers = #tpu.dot_dimension_numbers<[2], [1], [1], [2], [0, 0, 0, 1, 1, 2], [0], [0]>} : vector<4x8x8xbf16>, vector<4x8x16xbf16>, vector<4x8x16xf32> -> vector<4x8x16xf32>
    "tpu.trace_stop"() : () -> ()
    %42 = vector.shape_cast %41 : vector<4x8x16xf32> to vector<32x16xf32>
    %43 = arith.truncf %42 : vector<32x16xf32> to vector<32x16xbf16>
    %44 = vector.extract_strided_slice %6 {offsets = [0, 0], sizes = [16, 64], strides = [1, 1]} : vector<64x64xbf16> to vector<16x64xbf16>
    %cst_14 = arith.constant dense<0.000000e+00> : vector<32x64xf32>
    %45 = tpu.matmul %43, %44, %cst_14 {dimension_numbers = #tpu.dot_dimension_numbers<[1], [0], [0], [1], [0, 0, 1, 1], [], []>} : vector<32x16xbf16>, vector<16x64xbf16>, vector<32x64xf32> -> vector<32x64xf32>
    %46 = arith.addf %14, %45 : vector<32x64xf32>
    %47 = vector.extract_strided_slice %7 {offsets = [0, 16], sizes = [32, 16], strides = [1, 1]} : vector<32x192xf32> to vector<32x16xf32>
    %48 = vector.shape_cast %47 : vector<32x16xf32> to vector<4x8x16xf32>
    %49 = vector.extract_strided_slice %7 {offsets = [0, 80], sizes = [32, 16], strides = [1, 1]} : vector<32x192xf32> to vector<32x16xf32>
    %50 = vector.shape_cast %49 : vector<32x16xf32> to vector<4x8x16xf32>
    %51 = vector.extract_strided_slice %7 {offsets = [0, 144], sizes = [32, 16], strides = [1, 1]} : vector<32x192xf32> to vector<32x16xf32>
    %52 = vector.shape_cast %51 : vector<32x16xf32> to vector<4x8x16xf32>
    %53 = arith.truncf %48 : vector<4x8x16xf32> to vector<4x8x16xbf16>
    %54 = arith.truncf %50 : vector<4x8x16xf32> to vector<4x8x16xbf16>
    "tpu.trace_start"() <{level = 10 : i32, message = "btd,bsd->bts"}> : () -> ()
    %cst_15 = arith.constant dense<0.000000e+00> : vector<4x8x8xf32>
    %55 = tpu.matmul %53, %54, %cst_15 {dimension_numbers = #tpu.dot_dimension_numbers<[2], [2], [1], [1], [0, 0, 0, 1, 1, 1], [0], [0]>} : vector<4x8x16xbf16>, vector<4x8x16xbf16>, vector<4x8x8xf32> -> vector<4x8x8xf32>
    "tpu.trace_stop"() : () -> ()
    %cst_16 = arith.constant 1.250000e-01 : f32
    %56 = vector.broadcast %cst_16 : f32 to vector<4x8x8xf32>
    %57 = arith.mulf %55, %56 : vector<4x8x8xf32>
    %58 = vector.shape_cast %13 : vector<8x8xf32> to vector<1x8x8xf32>
    %59 = vector.broadcast %58 : vector<1x8x8xf32> to vector<4x8x8xf32>
    %60 = arith.addf %57, %59 : vector<4x8x8xf32>
    %cst_17 = arith.constant dense<0xFF800000> : vector<4x8xf32>
    %61 = vector.multi_reduction <maximumf>, %60, %cst_17 [2] : vector<4x8x8xf32> to vector<4x8xf32>
    %62 = vector.shape_cast %61 : vector<4x8xf32> to vector<4x8x1xf32>
    %63 = vector.broadcast %62 : vector<4x8x1xf32> to vector<4x8x8xf32>
    %64 = arith.subf %60, %63 : vector<4x8x8xf32>
    %65 = math.exp %64 : vector<4x8x8xf32>
    %cst_18 = arith.constant dense<0.000000e+00> : vector<4x8xf32>
    %66 = vector.multi_reduction <add>, %65, %cst_18 [2] : vector<4x8x8xf32> to vector<4x8xf32>
    %67 = vector.shape_cast %66 : vector<4x8xf32> to vector<4x8x1xf32>
    %68 = tpu.reciprocal %67 {approx = true} : vector<4x8x1xf32> -> vector<4x8x1xf32>
    %69 = vector.broadcast %68 : vector<4x8x1xf32> to vector<4x8x8xf32>
    %70 = arith.mulf %65, %69 : vector<4x8x8xf32>
    %71 = arith.truncf %70 : vector<4x8x8xf32> to vector<4x8x8xbf16>
    %72 = arith.truncf %52 : vector<4x8x16xf32> to vector<4x8x16xbf16>
    "tpu.trace_start"() <{level = 10 : i32, message = "bts,bsd->btd"}> : () -> ()
    %cst_19 = arith.constant dense<0.000000e+00> : vector<4x8x16xf32>
    %73 = tpu.matmul %71, %72, %cst_19 {dimension_numbers = #tpu.dot_dimension_numbers<[2], [1], [1], [2], [0, 0, 0, 1, 1, 2], [0], [0]>} : vector<4x8x8xbf16>, vector<4x8x16xbf16>, vector<4x8x16xf32> -> vector<4x8x16xf32>
    "tpu.trace_stop"() : () -> ()
    %74 = vector.shape_cast %73 : vector<4x8x16xf32> to vector<32x16xf32>
    %75 = arith.truncf %74 : vector<32x16xf32> to vector<32x16xbf16>
    %76 = vector.extract_strided_slice %6 {offsets = [16, 0], sizes = [16, 64], strides = [1, 1]} : vector<64x64xbf16> to vector<16x64xbf16>
    %cst_20 = arith.constant dense<0.000000e+00> : vector<32x64xf32>
    %77 = tpu.matmul %75, %76, %cst_20 {dimension_numbers = #tpu.dot_dimension_numbers<[1], [0], [0], [1], [0, 0, 1, 1], [], []>} : vector<32x16xbf16>, vector<16x64xbf16>, vector<32x64xf32> -> vector<32x64xf32>
    %78 = arith.addf %46, %77 : vector<32x64xf32>
    %79 = vector.extract_strided_slice %7 {offsets = [0, 32], sizes = [32, 16], strides = [1, 1]} : vector<32x192xf32> to vector<32x16xf32>
    %80 = vector.shape_cast %79 : vector<32x16xf32> to vector<4x8x16xf32>
    %81 = vector.extract_strided_slice %7 {offsets = [0, 96], sizes = [32, 16], strides = [1, 1]} : vector<32x192xf32> to vector<32x16xf32>
    %82 = vector.shape_cast %81 : vector<32x16xf32> to vector<4x8x16xf32>
    %83 = vector.extract_strided_slice %7 {offsets = [0, 160], sizes = [32, 16], strides = [1, 1]} : vector<32x192xf32> to vector<32x16xf32>
    %84 = vector.shape_cast %83 : vector<32x16xf32> to vector<4x8x16xf32>
    %85 = arith.truncf %80 : vector<4x8x16xf32> to vector<4x8x16xbf16>
    %86 = arith.truncf %82 : vector<4x8x16xf32> to vector<4x8x16xbf16>
    "tpu.trace_start"() <{level = 10 : i32, message = "btd,bsd->bts"}> : () -> ()
    %cst_21 = arith.constant dense<0.000000e+00> : vector<4x8x8xf32>
    %87 = tpu.matmul %85, %86, %cst_21 {dimension_numbers = #tpu.dot_dimension_numbers<[2], [2], [1], [1], [0, 0, 0, 1, 1, 1], [0], [0]>} : vector<4x8x16xbf16>, vector<4x8x16xbf16>, vector<4x8x8xf32> -> vector<4x8x8xf32>
    "tpu.trace_stop"() : () -> ()
    %cst_22 = arith.constant 1.250000e-01 : f32
    %88 = vector.broadcast %cst_22 : f32 to vector<4x8x8xf32>
    %89 = arith.mulf %87, %88 : vector<4x8x8xf32>
    %90 = vector.shape_cast %13 : vector<8x8xf32> to vector<1x8x8xf32>
    %91 = vector.broadcast %90 : vector<1x8x8xf32> to vector<4x8x8xf32>
    %92 = arith.addf %89, %91 : vector<4x8x8xf32>
    %cst_23 = arith.constant dense<0xFF800000> : vector<4x8xf32>
    %93 = vector.multi_reduction <maximumf>, %92, %cst_23 [2] : vector<4x8x8xf32> to vector<4x8xf32>
    %94 = vector.shape_cast %93 : vector<4x8xf32> to vector<4x8x1xf32>
    %95 = vector.broadcast %94 : vector<4x8x1xf32> to vector<4x8x8xf32>
    %96 = arith.subf %92, %95 : vector<4x8x8xf32>
    %97 = math.exp %96 : vector<4x8x8xf32>
    %cst_24 = arith.constant dense<0.000000e+00> : vector<4x8xf32>
    %98 = vector.multi_reduction <add>, %97, %cst_24 [2] : vector<4x8x8xf32> to vector<4x8xf32>
    %99 = vector.shape_cast %98 : vector<4x8xf32> to vector<4x8x1xf32>
    %100 = tpu.reciprocal %99 {approx = true} : vector<4x8x1xf32> -> vector<4x8x1xf32>
    %101 = vector.broadcast %100 : vector<4x8x1xf32> to vector<4x8x8xf32>
    %102 = arith.mulf %97, %101 : vector<4x8x8xf32>
    %103 = arith.truncf %102 : vector<4x8x8xf32> to vector<4x8x8xbf16>
    %104 = arith.truncf %84 : vector<4x8x16xf32> to vector<4x8x16xbf16>
    "tpu.trace_start"() <{level = 10 : i32, message = "bts,bsd->btd"}> : () -> ()
    %cst_25 = arith.constant dense<0.000000e+00> : vector<4x8x16xf32>
    %105 = tpu.matmul %103, %104, %cst_25 {dimension_numbers = #tpu.dot_dimension_numbers<[2], [1], [1], [2], [0, 0, 0, 1, 1, 2], [0], [0]>} : vector<4x8x8xbf16>, vector<4x8x16xbf16>, vector<4x8x16xf32> -> vector<4x8x16xf32>
    "tpu.trace_stop"() : () -> ()
    %106 = vector.shape_cast %105 : vector<4x8x16xf32> to vector<32x16xf32>
    %107 = arith.truncf %106 : vector<32x16xf32> to vector<32x16xbf16>
    %108 = vector.extract_strided_slice %6 {offsets = [32, 0], sizes = [16, 64], strides = [1, 1]} : vector<64x64xbf16> to vector<16x64xbf16>
    %cst_26 = arith.constant dense<0.000000e+00> : vector<32x64xf32>
    %109 = tpu.matmul %107, %108, %cst_26 {dimension_numbers = #tpu.dot_dimension_numbers<[1], [0], [0], [1], [0, 0, 1, 1], [], []>} : vector<32x16xbf16>, vector<16x64xbf16>, vector<32x64xf32> -> vector<32x64xf32>
    %110 = arith.addf %78, %109 : vector<32x64xf32>
    %111 = vector.extract_strided_slice %7 {offsets = [0, 48], sizes = [32, 16], strides = [1, 1]} : vector<32x192xf32> to vector<32x16xf32>
    %112 = vector.shape_cast %111 : vector<32x16xf32> to vector<4x8x16xf32>
    %113 = vector.extract_strided_slice %7 {offsets = [0, 112], sizes = [32, 16], strides = [1, 1]} : vector<32x192xf32> to vector<32x16xf32>
    %114 = vector.shape_cast %113 : vector<32x16xf32> to vector<4x8x16xf32>
    %115 = vector.extract_strided_slice %7 {offsets = [0, 176], sizes = [32, 16], strides = [1, 1]} : vector<32x192xf32> to vector<32x16xf32>
    %116 = vector.shape_cast %115 : vector<32x16xf32> to vector<4x8x16xf32>
    %117 = arith.truncf %112 : vector<4x8x16xf32> to vector<4x8x16xbf16>
    %118 = arith.truncf %114 : vector<4x8x16xf32> to vector<4x8x16xbf16>
    "tpu.trace_start"() <{level = 10 : i32, message = "btd,bsd->bts"}> : () -> ()
    %cst_27 = arith.constant dense<0.000000e+00> : vector<4x8x8xf32>
    %119 = tpu.matmul %117, %118, %cst_27 {dimension_numbers = #tpu.dot_dimension_numbers<[2], [2], [1], [1], [0, 0, 0, 1, 1, 1], [0], [0]>} : vector<4x8x16xbf16>, vector<4x8x16xbf16>, vector<4x8x8xf32> -> vector<4x8x8xf32>
    "tpu.trace_stop"() : () -> ()
    %cst_28 = arith.constant 1.250000e-01 : f32
    %120 = vector.broadcast %cst_28 : f32 to vector<4x8x8xf32>
    %121 = arith.mulf %119, %120 : vector<4x8x8xf32>
    %122 = vector.shape_cast %13 : vector<8x8xf32> to vector<1x8x8xf32>
    %123 = vector.broadcast %122 : vector<1x8x8xf32> to vector<4x8x8xf32>
    %124 = arith.addf %121, %123 : vector<4x8x8xf32>
    %cst_29 = arith.constant dense<0xFF800000> : vector<4x8xf32>
    %125 = vector.multi_reduction <maximumf>, %124, %cst_29 [2] : vector<4x8x8xf32> to vector<4x8xf32>
    %126 = vector.shape_cast %125 : vector<4x8xf32> to vector<4x8x1xf32>
    %127 = vector.broadcast %126 : vector<4x8x1xf32> to vector<4x8x8xf32>
    %128 = arith.subf %124, %127 : vector<4x8x8xf32>
    %129 = math.exp %128 : vector<4x8x8xf32>
    %cst_30 = arith.constant dense<0.000000e+00> : vector<4x8xf32>
    %130 = vector.multi_reduction <add>, %129, %cst_30 [2] : vector<4x8x8xf32> to vector<4x8xf32>
    %131 = vector.shape_cast %130 : vector<4x8xf32> to vector<4x8x1xf32>
    %132 = tpu.reciprocal %131 {approx = true} : vector<4x8x1xf32> -> vector<4x8x1xf32>
    %133 = vector.broadcast %132 : vector<4x8x1xf32> to vector<4x8x8xf32>
    %134 = arith.mulf %129, %133 : vector<4x8x8xf32>
    %135 = arith.truncf %134 : vector<4x8x8xf32> to vector<4x8x8xbf16>
    %136 = arith.truncf %116 : vector<4x8x16xf32> to vector<4x8x16xbf16>
    "tpu.trace_start"() <{level = 10 : i32, message = "bts,bsd->btd"}> : () -> ()
    %cst_31 = arith.constant dense<0.000000e+00> : vector<4x8x16xf32>
    %137 = tpu.matmul %135, %136, %cst_31 {dimension_numbers = #tpu.dot_dimension_numbers<[2], [1], [1], [2], [0, 0, 0, 1, 1, 2], [0], [0]>} : vector<4x8x8xbf16>, vector<4x8x16xbf16>, vector<4x8x16xf32> -> vector<4x8x16xf32>
    "tpu.trace_stop"() : () -> ()
    %138 = vector.shape_cast %137 : vector<4x8x16xf32> to vector<32x16xf32>
    %139 = arith.truncf %138 : vector<32x16xf32> to vector<32x16xbf16>
    %140 = vector.extract_strided_slice %6 {offsets = [48, 0], sizes = [16, 64], strides = [1, 1]} : vector<64x64xbf16> to vector<16x64xbf16>
    %cst_32 = arith.constant dense<0.000000e+00> : vector<32x64xf32>
    %141 = tpu.matmul %139, %140, %cst_32 {dimension_numbers = #tpu.dot_dimension_numbers<[1], [0], [0], [1], [0, 0, 1, 1], [], []>} : vector<32x16xbf16>, vector<16x64xbf16>, vector<32x64xf32> -> vector<32x64xf32>
    %142 = arith.addf %110, %141 : vector<32x64xf32>
    %c0_33 = arith.constant 0 : index
    %c0_34 = arith.constant 0 : index
    %143 = vector.load %arg4[%c0_33, %c0_34] : memref<1x64xf32, #tpu.memory_space<vmem>>, vector<1x64xf32>
    %144 = vector.broadcast %143 : vector<1x64xf32> to vector<32x64xf32>
    %145 = arith.addf %142, %144 : vector<32x64xf32>
    %146 = vector.shape_cast %145 : vector<32x64xf32> to vector<4x8x64xf32>
    %c0_35 = arith.constant 0 : index
    %c0_36 = arith.constant 0 : index
    %c0_37 = arith.constant 0 : index
    %147 = vector.load %arg5[%c0_35, %c0_36, %c0_37] : memref<4x8x64xf32, #tpu.memory_space<vmem>>, vector<4x8x64xf32>
    tpu.vector_store %arg5[%c0_35, %c0_36, %c0_37], %146 {strides = array<i32>} : memref<4x8x64xf32, #tpu.memory_space<vmem>>, vector<4x8x64xf32>,
    return
  }
  func.func @transform_0(%arg0: i32) -> (i32, i32, i32) {
    %c0_i32 = arith.constant 0 : i32
    %c0_i32_0 = arith.constant 0 : i32
    %c0_i32_1 = arith.constant 0 : i32
    return %arg0, %c0_i32, %c0_i32_0 : i32, i32, i32
  }
  func.func @transform_1(%arg0: i32) -> (i32, i32) {
    %c0_i32 = arith.constant 0 : i32
    %c0_i32_0 = arith.constant 0 : i32
    %c0_i32_1 = arith.constant 0 : i32
    return %c0_i32, %c0_i32_0 : i32, i32
  }
  func.func @transform_2(%arg0: i32) -> (i32, i32) {
    %c0_i32 = arith.constant 0 : i32
    %c0_i32_0 = arith.constant 0 : i32
    %c0_i32_1 = arith.constant 0 : i32
    return %c0_i32, %c0_i32_0 : i32, i32
  }
  func.func @transform_3(%arg0: i32) -> (i32, i32) {
    %c0_i32 = arith.constant 0 : i32
    %c0_i32_0 = arith.constant 0 : i32
    %c0_i32_1 = arith.constant 0 : i32
    return %c0_i32, %c0_i32_0 : i32, i32
  }
  func.func @transform_4(%arg0: i32) -> (i32, i32, i32) {
    %c0_i32 = arith.constant 0 : i32
    %c0_i32_0 = arith.constant 0 : i32
    %c0_i32_1 = arith.constant 0 : i32
    return %arg0, %c0_i32, %c0_i32_0 : i32, i32, i32
  }
}

</mosaic_0001>

<bundles_post_ra>
// kernel: tpu_custom_call.1
= control target key start
LH: loop header
LB: loop body
LE: loop exit
PB: predicated region body
PF: predicated region fallthrough
CT: control target
= control target key end

     0   :  { %9 = vsyncpa [#allocation3], 0  ;;  %s3818_s0 = inlined_call_operand.hbm [shape: f32[8,8,64], index: 0, kind: input, shape index: {}]   ;;  %s3819_s1 = inlined_call_operand.hbm [shape: f32[64,192], index: 1, kind: input, shape index: {}]   ;;  %s3820_s2 = inlined_call_operand.hbm [shape: f32[64,64], index: 2, kind: input, shape index: {}]   ;;  %s3821_s3 = inlined_call_operand.vmem [shape: f32[1,64], index: 3, kind: input, shape index: {}]   ;;  %s3822_s4 = inlined_call_operand.hbm [shape: f32[8,8,64], index: 4, kind: output, shape index: {}]  }
   0x1   :  { %11 = vsyncpa [#allocation3 + $0x1], 0 }
   0x2   :  { %12 = vsyncpa [#allocation6], 0 }
   0x3   :  { %13 = vsyncpa [#allocation4], 0 }
   0x4   :  { %15 = vsyncpa [#allocation4 + $0x1], 0  ;;  %s3227_s15 = smov 0   ;;  %s3229_s16 = smov 0  }
   0x5   :  { %s3231_s17 = smov 0   ;;  %s3233_s18 = smov 0  }
   0x6 LB: > { %s3248_s19 = sadd.s32 4294967295, %s3179_s18   ;;  %s2508_s20 = sadd.s32 4294967294, %s3179_s18   ;;  %s3179_s18 = sphi %s3233_s18, %s3842_s18   ;;  %s3175_s17 = sphi %s3231_s17, %s3841_s17   ;;  %s3171_s16 = sphi %s3229_s16, %s3840_s16   ;;  %s3167_s15 = sphi %s3227_s15, %s3839_s15  }
   0x7   : > { %p41_p0 = scmp.ne.s32.totalorder %s3171_s16, %s3167_s15  ;;  %p3823_p1 = scmp.eq.s32.totalorder %s3248_s19, 0 }
   0x8   : > { %p134_p3 = scmp.eq.s32.totalorder %s2508_s20, 1  ;;  %p2509_p5 = scmp.ge.s32.totalorder %s3179_s18, 1 }
   0x9   : > { %p3257_p4 = por %p3823_p1, %p41_p0  ;;  %p141_p7 = scmp.lt.s32.totalorder %s3179_s18, 3 }
   0xa   : > { %p3262_p6 = por %p134_p3, %p41_p0  ;;  %s3181_s24 = smov [#allocation5]  }
   0xb   : > { %s3826_s21 = scalar_select %p3257_p4, 1, 0 }
   0xc   : > { %s3827_s22 = scalar_select %p3262_p6, 1, 0 }
   0xd   : > { %p3267_p8 = pnand %p2509_p5, %p141_p7  ;;  %s153_s25 = sshll.u32 %s3181_s24, 4  ;;  %s3271_s25 = int_to_ptr.vmem [resolvable:$true] %s153_s25 }
   0xe   : > { %s3182_s27 = smov [#allocation7]   ;;  %s3023_s5 = scalar_lea.hbm %s3819_s1, 2048 }
   0xf   : > { %p2887_p9 = pneg %p3267_p8  ;;  %s166_s28 = sshll.u32 %s3182_s27, 4  ;;  %s3282_s28 = int_to_ptr.vmem [resolvable:$true] %s166_s28 }
  0x10   : > { %p3024_p12 = scmp.ne.s32.totalorder %s3819_s1, %s3023_s5  ;;  %p3030_p5 = scmp.lt.u32.totalorder %s3023_s5, %s3819_s1 }
  0x11   : > { %p3278_p11 = pnand %p2887_p9, %p3823_p1 }
  0x13   : > { %p3025_p13 = pneg %p3278_p11 }
  0x15   : > { %p3026_p0 = pnand %p3025_p13, %p3024_p12 }
  0x17   : > { %p3027_p3 = pneg %p3026_p0 }
  0x19   : > { %p3032_p7 = pnand %p3030_p5, %p3027_p3 }
  0x1b   : > { %3035 = shalt.err (!%p3032_p7)
}
  0x1c   : > { %s3036_s10 = scalar_lea.vmem %s3271_s25, 2048  ;;  %p3044_p2 = scmp.lt.s32.totalorder %s3271_s25, %s3271_s25 }
  0x1d   : > { %p3037_p9 = scmp.ne.s32.totalorder %s3271_s25, %s3036_s10  ;;  %p3045_p12 = scmp.lt.s32.totalorder %s3036_s10, %s3036_s10 }
  0x1f   : > { %p3039_p10 = pnand %p3037_p9, %p3025_p13  ;;  %p3046_p0 = por %p3045_p12, %p3044_p2 }
  0x21   : > { %p3040_p1 = pneg %p3039_p10 }
  0x23   : > { %p3047_p6 = pnand %p3046_p0, %p3040_p1 }
  0x25   : > { %3050 = shalt.err (!%p3047_p6)
}
  0x26   : > { %s3183_s11 = smov 256   ;;  %s3184_s12 = smov 16  }
  0x27   : > { %2890 = dma.hbm_to_vmem [thread:$0]  (!%p3278_p11), %s3819_s1, 2048, %s3271_s25, [#allocation6], %s3183_s11, %s3183_s11, %s3184_s12  }
  0x28   : > { %s3051_s27 = scalar_lea.hbm %s3820_s2, 1024 }
  0x29   : > { %p3052_p2 = scmp.ne.s32.totalorder %s3820_s2, %s3051_s27  ;;  %p3058_p10 = scmp.lt.u32.totalorder %s3051_s27, %s3820_s2 }
  0x2b   : > { %p3054_p1 = pnand %p3052_p2, %p3025_p13 }
  0x2d   : > { %p3055_p6 = pneg %p3054_p1 }
  0x2f   : > { %p3060_p3 = pnand %p3058_p10, %p3055_p6 }
  0x31   : > { %3063 = shalt.err (!%p3060_p3)
}
  0x32   : > { %s3064_s25 = scalar_lea.vmem %s3282_s28, 1024  ;;  %p3072_p12 = scmp.lt.s32.totalorder %s3282_s28, %s3282_s28 }
  0x33   : > { %p3065_p5 = scmp.ne.s32.totalorder %s3282_s28, %s3064_s25  ;;  %p3073_p0 = scmp.lt.s32.totalorder %s3064_s25, %s3064_s25 }
  0x35   : > { %p3067_p7 = pnand %p3065_p5, %p3025_p13  ;;  %p3074_p2 = por %p3073_p0, %p3072_p12 }
  0x37   : > { %p3068_p9 = pneg %p3067_p7 }
  0x39   : > { %p3075_p1 = pnand %p3074_p2, %p3068_p9 }
  0x3b   : > { %3078 = shalt.err (!%p3075_p1)
}
  0x3c   : > { %s3185_s7 = smov 128   ;;  %s3186_s8 = smov 8  }
  0x3d   : > { %2893 = dma.hbm_to_vmem [thread:$0]  (!%p3278_p11), %s3820_s2, 1024, %s3282_s28, [#allocation6], %s3185_s7, %s3185_s7, %s3186_s8  }
  0x3e   : > { %s3340_s11 = sadd.s32 1, %s3179_s18   ;;  %s28_s13 = sadd.s32 1, %s3175_s17 }
  0x3f   : > { %s25_s12 = ssub.s32 %s3179_s18, %s3340_s11  ;;  %p35_p6 = scmp.ne.s32.totalorder %s3175_s17, %s3171_s16 }
  0x40   : > { %p26_p13 = scmp.eq.s32.totalorder %s25_s12, 0  ;;  %p36_p10 = scmp.eq.s32.totalorder %s3179_s18, 0 }
  0x41   : > { %p3830_p5 = scmp.eq.s32.totalorder %s3248_s19, 1  ;;  %p2904_p9 = scmp.lt.s32.totalorder %s3179_s18, 2 }
  0x42   : > { %s3349_s14 = scalar_select %p26_p13, %s3175_s17, %s28_s13  }
  0x43   : > { %p37_p3 = por %p36_p10, %p35_p6  ;;  %p3353_p7 = por %p3830_p5, %p35_p6 }
  0x44   : > { %s183_s20 = sand.u32 1, %s3175_s17   ;;  %s2569_s28 = sshll.u32 %s3179_s18, 9 }
  0x45   : > { %s3831_s26 = scalar_select %p3353_p7, 1, 0 }
  0x46   : > { %s2513_s24 = sshll.u32 %s183_s20, 5  ;;  %s3363_s30 = scalar_lea.hbm %s3818_s0, %s2569_s28 }
  0x47   : > { %s187_s5 = scalar_lea.vmem [#allocation2], %s2513_s24  ;;  %p3367_p11 = pnand %p2904_p9, %p37_p3 }
  0x48   : > { %s194_s6 = sshll.u32 %s187_s5, 4  ;;  %s3371_s9 = scalar_lea.sflag [#allocation3], %s183_s20  ;;  %s3365_s6 = int_to_ptr.vmem [resolvable:$true] %s194_s6 }
  0x49   : > { %s3079_s10 = scalar_lea.hbm %s3363_s30, 512  ;;  %p3081_p0 = pneg %p3367_p11 }
  0x4a   : > { %p3080_p12 = scmp.ne.s32.totalorder %s3363_s30, %s3079_s10  ;;  %s3084_s24 = scalar_lea.hbm %s3818_s0, 1024 }
  0x4b   : > { %p3085_p13 = scmp.lt.u32.totalorder %s3363_s30, %s3818_s0  ;;  %p3086_p6 = scmp.lt.u32.totalorder %s3084_s24, %s3079_s10 }
  0x4c   : > { %p3082_p2 = pnand %p3081_p0, %p3080_p12  ;;  %p3088_p3 = scmp.lt.u32.totalorder %s3079_s10, %s3363_s30 }
  0x4d   : > { %p3087_p10 = por %p3086_p6, %p3085_p13 }
  0x4e   : > { %p3083_p1 = pneg %p3082_p2 }
  0x4f   : > { %p3089_p5 = por %p3088_p3, %p3087_p10 }
  0x51   : > { %p3090_p9 = pnand %p3089_p5, %p3083_p1 }
  0x53   : > { %3093 = shalt.err (!%p3090_p9)
}
  0x54   : > { %s3094_s20 = scalar_lea.vmem %s3365_s6, 512  ;;  %s3187_s29 = smov [#allocation2]  }
  0x55   : > { %p3095_p12 = scmp.ne.s32.totalorder %s3365_s6, %s3094_s20  ;;  %s3099_s5 = sshll.u32 %s3187_s29, 4  ;;  %s3100_s5 = int_to_ptr.vmem [resolvable:$false] %s3099_s5 }
  0x56   : > { %s3101_s12 = scalar_lea.vmem %s3100_s5, 1024  ;;  %p3102_p4 = scmp.lt.s32.totalorder %s3365_s6, %s3100_s5 }
  0x57   : > { %p3097_p2 = pnand %p3095_p12, %p3081_p0  ;;  %p3103_p13 = scmp.lt.s32.totalorder %s3101_s12, %s3094_s20 }
  0x59   : > { %p3098_p7 = pneg %p3097_p2  ;;  %p3104_p6 = por %p3103_p13, %p3102_p4 }
  0x5b   : > { %p3105_p10 = pnand %p3104_p6, %p3098_p7 }
  0x5d   : > { %3108 = shalt.err (!%p3105_p10)
}
  0x5e   : > { %2897 = dma.hbm_to_vmem [thread:$0]  (!%p3367_p11), %s3363_s30, 512, %s3365_s6, %s3371_s9, %s3185_s7, %s3185_s7, %s3186_s8  }
  0x5f   : > { %206 = sbr.rel (%p3267_p8) target bundleno = 3585 (0xe01), region = 36  ;;  %s3405_s10 = sand.u32 (!%p3267_p8), 1, %s3171_s16  }
  0x60   : > { %s2517_s13 = sshll.u32 (!%p3267_p8), %s3405_s10, 5  ;;  %s209_s24 = scalar_lea.sflag (!%p3267_p8), [#allocation3], %s3405_s10 }
  0x61   : > { %s3411_s25 = scalar_lea.vmem (!%p3267_p8), [#allocation2], %s2517_s13  ;;  %p3833_p4 = scmp.ne.s32.totalorder (!%p3267_p8), %s3826_s21, 0 }
  0x66   : > { %3154 = dma.done.wait (%p3833_p4), %s209_s24, 512  }
  0x67   : > { %3156 = vsyncadd (%p3833_p4), %s209_s24, 4294966784  ;;  %p3834_p7 = scmp.eq.s32.totalorder %s3248_s19, 0 }
  0x69   : > { %3158 = dma.done.wait (%p3834_p7), [#allocation6], 3072   ;;  %p3835_p8 = pmov %p3834_p7 }
  0x6a   : > { %v3188_v0 = vmov 0   ;;  %v255_v1 = vld [vmem:[#allocation5 + $0x8] sm:$0xff]  ;;  %v257_v2 = vld [vmem:[#allocation5 + $0x18] sm:$0xff]  ;;  %v254_v3 = vld [vmem:[#allocation5] sm:$0xff]  ;;  %vm290_vm0 = vcmask 523264   ;;  %v3189_v31 = vmov 0.0   ;;  %v350_v56 = vlaneseq }
  0x6b   : > { %3160 = vsyncadd (%p3835_p8), [#allocation6], 4294964224  ;;  %329 = vmatprep.mubr.bf16.mxu0 %v3188_v0  ;;  %v271_v4 = vpack.c.bf16 %v257_v2, %v255_v1  ;;  %v256_v5 = vld [vmem:[#allocation5 + $0x10] sm:$0xff]  ;;  %v259_v6 = vld [vmem:[#allocation5 + $0x28] sm:$0xff]  ;;  %2647 = vmatprep.subr.bf16.mxu1 %v3189_v31  ;;  %vm3190_vm1 = vmmov 0   ;;  %s3191_s21 = smov 64  }
  0x6c   : > { %v261_v7 = vld [vmem:[#allocation5 + $0x38] sm:$0xff]  ;;  %v270_v8 = vpack.c.bf16 %v256_v5, %v254_v3  ;;  %v258_v10 = vld [vmem:[#allocation5 + $0x20] sm:$0xff]  ;;  %v260_v11 = vld [vmem:[#allocation5 + $0x30] sm:$0xff]  ;;  %2649 = vmatprep.mubr.msk.bf16.mxu1 %vm3190_vm1, %v3189_v31  ;;  %vm363_vm2 = vcmask 130048   ;;  %vm621_vm3 = vcmask 1043456   ;;  %v351_v57 = vshrl.u32 %v350_v56, 7 }
  0x6d   : > { %v273_v9 = vpack.c.bf16 %v261_v7, %v259_v6  ;;  %v263_v12 = vld [vmem:[#allocation5 + $0x48] sm:$0xff]  ;;  %297 = vmatprep.subr.bf16.mxu0 %v271_v4  ;;  %v265_v13 = vld [vmem:[#allocation5 + $0x58] sm:$0xff]  ;;  %v272_v14 = vpack.c.bf16 %v260_v11, %v258_v10  ;;  %v262_v16 = vld [vmem:[#allocation5 + $0x40] sm:$0xff]  ;;  %v353_v58 = vand.u32 127, %v350_v56  ;;  %v3192_v60 = vmov -1e+30  }
  0x6e   : > { %298 = vmatpush1.bf16.msra.mxu0 %v270_v8  ;;  %v275_v15 = vpack.c.bf16 %v265_v13, %v263_v12  ;;  %v264_v17 = vld [vmem:[#allocation5 + $0x50] sm:$0xff]  ;;  %v267_v18 = vld [vmem:[#allocation5 + $0x68] sm:$0xff]  ;;  %v269_v19 = vld [vmem:[#allocation5 + $0x78] sm:$0xff]  ;;  %vm565_vm5 = vcmask 64512   ;;  %s3193_s23 = smov 48   ;;  %s3194_s7 = smov 112  }
  0x6f   : > { %299 = vmatprep.subr.bf16.mxu0 %v273_v9  ;;  %v274_v20 = vpack.c.bf16 %v264_v17, %v262_v16  ;;  %v277_v21 = vpack.c.bf16 %v269_v19, %v267_v18  ;;  %v266_v22 = vld [vmem:[#allocation5 + $0x60] sm:$0xff]  ;;  %v268_v23 = vld [vmem:[#allocation5 + $0x70] sm:$0xff]  ;;  %v249_v26 = vld [vmem:[%s3411_s25 + $0x8] sm:$0xff]  ;;  %vm354_vm4 = vcmp.le.s32.totalorder %v353_v58, %v351_v57  ;;  %s3195_s8 = smov 96   ;;  %s3196_s30 = smov 32  }
  0x70   : > { %v276_v24 = vpack.c.bf16 %v268_v23, %v266_v22  ;;  %v248_v25 = vld [vmem:[%s3411_s25] sm:$0xff]  ;;  %v250_v28 = vld [vmem:[%s3411_s25 + $0x10] sm:$0xff]  ;;  %v251_v29 = vld [vmem:[%s3411_s25 + $0x18] sm:$0xff]  ;;  %v3483_v61 = vsel %vm354_vm4, 0.0, %v3192_v60  ;;  %s3197_s6 = smov 16   ;;  %s3198_s9 = smov 80  }
  0x71   : > { %v252_v27 = vpack.c.bf16 %v249_v26, %v248_v25  ;;  %v253_v30 = vpack.c.bf16 %v251_v29, %v250_v28  ;;  %s244_s20 = scalar_lea.vmem [#allocation8], %s2517_s13  ;;  %s2570_s5 = sshll.u32 %s3248_s19, 9 }
  0x72   : > { %300 = vmatpush1.bf16.msra.mxu0 %v272_v14  ;;  %s2416_s29 = sshll.u32 %s244_s20, 4  ;;  %s3771_s24 = scalar_lea.hbm %s3822_s4, %s2570_s5  ;;  %s3765_s29 = int_to_ptr.vmem [resolvable:$true] %s2416_s29 }
  0x73   : > { %301 = vmatprep.subr.bf16.mxu0 %v275_v15  ;;  %s2403_s19 = scalar_lea.sflag [#allocation4], %s3405_s10  ;;  %s3109_s25 = scalar_lea.vmem %s3765_s29, 512 }
  0x74   : > { %p3110_p11 = scmp.ne.s32.totalorder %s3765_s29, %s3109_s25  ;;  %p3836_p0 = scmp.ne.s32.totalorder %s3831_s26, 0 }
  0x76   : > { %302 = vmatpush1.bf16.msra.mxu0 %v274_v20  ;;  %p3111_p1 = pnand %p3110_p11, %p3836_p0 }
  0x77   : > { %303 = vmatprep.subr.bf16.mxu0 %v277_v21 }
  0x78   : > { %p3112_p3 = pneg %p3111_p1 }
  0x7a   : > { %304 = vmatpush1.bf16.msra.mxu0 %v276_v24 }
  0x7b   : > { %2665 = vmatprep.subr.bf16.mxu0 %v3189_v31 }
  0x7d   : > { %2521 = vmatmul.mubr.msk.bf16.vlgmr.msra.gmra.mrb[0].mxu0 %vm290_vm0, %v252_v27 }
  0x7e   : > { %339 = vmatprep.mubr.bf16.mxu0 %v3188_v0 }
  0x85   : > { %2522 = vmatmul.mubr.msk.bf16.gmra.mrb[4].mxu0 %vm290_vm0, %v253_v30 }
  0x86   : > { %2667 = vmatprep.mubr.msk.bf16.mxu0 %vm3190_vm1, %v3189_v31 }
 0x150   : > { %v331_v32 = vpop.f32.mrb[0].mxu0 }
 0x151   : > { %v3433_v33 = vpack.c.bf16 %v331_v32, %v331_v32  ;;  %v333_v34 = vpop.f32.mrb[1].mxu0 }
 0x152   : > { %v335_v35 = vpop.f32.mrb[2].mxu0  ;;  %v3467_v53 = vpack.c.bf16 %v333_v34, %v333_v34 }
 0x153   : > { %361 = vrot.lane.b32.xlu0 %v3433_v33, %s3191_s21  ;;  %v337_v36 = vpop.f32.mrb[3].mxu0  ;;  %v3436_v37 = vpack.c.bf16 %v335_v35, %v335_v35 }
 0x154   : > { %v3460_v52 = vpack.c.bf16 %v337_v36, %v337_v36  ;;  %v623_v55 = vsel %vm621_vm3, %v3467_v53, 0 }
 0x156   : > { %v669_v54 = vsel %vm621_vm3, %v3460_v52, 0 }
 0x157   : > { %411 = vrot.lane.b32.xlu0 %v3436_v37, %s3191_s21 }
 0x158   : > { %v341_v38 = vpop.f32.mrb[4].mxu0 }
 0x159   : > { %v3439_v39 = vpack.c.bf16 %v341_v38, %v341_v38  ;;  %v3441_v40 = vpop.f32.mrb[5].mxu0 }
 0x15a   : > { %v345_v41 = vpop.f32.mrb[6].mxu0  ;;  %v3511_v57 = vpack.c.bf16 %v3441_v40, %v3441_v40 }
 0x15b   : > { %460 = vrot.lane.b32.xlu1 %v3439_v39, %s3191_s21  ;;  %v3444_v42 = vpack.c.bf16 %v345_v41, %v345_v41  ;;  %v3446_v43 = vpop.f32.mrb[7].mxu0 }
 0x15c   : > { %v715_v60 = vsel %vm621_vm3, %v3511_v57, 0 }
 0x15f   : > { %509 = vrot.lane.b32.xlu1 %v3444_v42, %s3191_s21  ;;  %s3199_s21 = smov [#allocation8]  }
 0x1c5   : > { %v362_v44 = vpop.permute.xlu0 %361 }
 0x1c6   : > { %v368_v45 = vsel %vm363_vm2, %v362_v44, 0 }
 0x1c7   : > { %2648 = vmatpush3.bf16.xpose.msra.mxu1 %v368_v45 }
 0x1c8   : > { %2653 = vmatprep.subr.bf16.mxu1 %v3189_v31 }
 0x1c9   : > { %v412_v46 = vpop.permute.xlu0 %411 }
 0x1ca   : > { %v417_v48 = vsel %vm363_vm2, %v412_v46, 0 }
 0x1cd   : > { %v461_v47 = vpop.permute.xlu1 %460 }
 0x1ce   : > { %2650 = vmatmul.mubr.msk.bf16.vlgmr.msra.gmra.mrb[0].mxu1 %vm363_vm2, %v3433_v33  ;;  %v466_v51 = vsel %vm363_vm2, %v461_v47, 0 }
 0x1cf   : > { %2654 = vmatpush3.bf16.xpose.msra.mxu1 %v417_v48  ;;  %2655 = vmatprep.mubr.msk.bf16.mxu1 %vm3190_vm1, %v3189_v31 }
 0x1d0   : > { %2659 = vmatprep.subr.bf16.mxu1 %v3189_v31 }
 0x1d1   : > { %v510_v49 = vpop.permute.xlu1 %509 }
 0x1d2   : > { %v515_v50 = vsel %vm363_vm2, %v510_v49, 0 }
 0x1d3   : > { %2666 = vmatpush3.bf16.xpose.msra.mxu0 %v515_v50 }
 0x1d4   : > { %2677 = vmatprep.subr.bf16.mxu0 %v3189_v31 }
 0x1d6   : > { %2656 = vmatmul.mubr.msk.bf16.vlgmr.msra.gmra.mrb[4].mxu1 %vm363_vm2, %v3436_v37 }
 0x1d7   : > { %2660 = vmatpush3.bf16.xpose.msra.mxu1 %v466_v51  ;;  %2661 = vmatprep.mubr.msk.bf16.mxu1 %vm3190_vm1, %v3189_v31 }
 0x1d8   : > { %2671 = vmatprep.subr.bf16.mxu1 %v3189_v31 }
 0x1da   : > { %2668 = vmatmul.mubr.msk.bf16.vlgmr.msra.gmra.mrb[8].mxu0 %vm363_vm2, %v3444_v42 }
 0x1db   : > { %2678 = vmatpush3.bf16.msra.mxu0 %v669_v54  ;;  %2679 = vmatprep.mubr.msk.bf16.mxu0 %vm3190_vm1, %v3189_v31 }
 0x1dc   : > { %2689 = vmatprep.subr.bf16.mxu0 %v3189_v31 }
 0x1de   : > { %2662 = vmatmul.mubr.msk.bf16.vlgmr.msra.gmra.mrb[8].mxu1 %vm363_vm2, %v3439_v39 }
 0x1df   : > { %2672 = vmatpush3.bf16.msra.mxu1 %v623_v55  ;;  %2673 = vmatprep.mubr.msk.bf16.mxu1 %vm3190_vm1, %v3189_v31 }
 0x1e0   : > { %2683 = vmatprep.subr.bf16.mxu1 %v3189_v31 }
 0x2a1   : > { %v404_v59 = vpop.f32.mrb[0].mxu1 }
 0x2a2   : > { %v557_v62 = vmul.f32 0.125, %v404_v59  ;;  %v2651_v63 = vpop.f32.mrb[1].mxu1 }
 0x2a3   : > { %v407_v0 = vpop.f32.mrb[2].mxu1  ;;  %v3521_v63 = vpack.c.bf16 %v3446_v43, %v3446_v43 }
 0x2a4   : > { %v2652_v1 = vpop.f32.mrb[3].mxu1  ;;  %v561_v2 = vadd.f32 %v557_v62, %v3483_v61 }
 0x2a6   : > { %v566_v3 = vsel %vm565_vm5, %v561_v2, -inf }
 0x2a7   : > { %567 = vmax.xlane.f32.xlu0 %v566_v3 }
 0x2a9   : > { %v453_v4 = vpop.f32.mrb[4].mxu1 }
 0x2aa   : > { %v558_v5 = vmul.f32 0.125, %v453_v4  ;;  %v2657_v6 = vpop.f32.mrb[5].mxu1 }
 0x2ab   : > { %v456_v7 = vpop.f32.mrb[6].mxu1 }
 0x2ac   : > { %v2658_v8 = vpop.f32.mrb[7].mxu1  ;;  %v562_v9 = vadd.f32 %v558_v5, %v3483_v61 }
 0x2ad   : > { %v551_v10 = vpop.f32.mrb[8].mxu0 }
 0x2ae   : > { %v2669_v11 = vpop.f32.mrb[9].mxu0  ;;  %v569_v12 = vsel %vm565_vm5, %v562_v9, -inf  ;;  %v560_v16 = vmul.f32 0.125, %v551_v10 }
 0x2af   : > { %570 = vmax.xlane.f32.xlu1 %v569_v12  ;;  %v554_v13 = vpop.f32.mrb[10].mxu0 }
 0x2b0   : > { %v2670_v14 = vpop.f32.mrb[11].mxu0  ;;  %v564_v23 = vadd.f32 %v560_v16, %v3483_v61 }
 0x2b1   : > { %v502_v15 = vpop.f32.mrb[8].mxu1 }
 0x2b2   : > { %v559_v17 = vmul.f32 0.125, %v502_v15  ;;  %v2663_v18 = vpop.f32.mrb[9].mxu1  ;;  %v575_v24 = vsel %vm565_vm5, %v564_v23, -inf }
 0x2b3   : > { %v505_v19 = vpop.f32.mrb[10].mxu1 }
 0x2b4   : > { %v2664_v20 = vpop.f32.mrb[11].mxu1  ;;  %v563_v21 = vadd.f32 %v559_v17, %v3483_v61 }
 0x2b6   : > { %v572_v22 = vsel %vm565_vm5, %v563_v21, -inf }
 0x2b7   : > { %573 = vmax.xlane.f32.xlu0 %v572_v22 }
 0x2bb   : > { %576 = vmax.xlane.f32.xlu0 %v575_v24 }
 0x334   : > { %v568_v25 = vpop.xlane.xlu0 %567 }
 0x335   : > { %v578_v26 = vsub.f32 %v561_v2, %v568_v25  ;;  %v761_v2 = vsel %vm621_vm3, %v3521_v63, 0 }
 0x337   : > { %v582_v27 = vmul.f32 1.442695, %v578_v26 }
 0x339   : > { %2959 = vpow2.f32 %v582_v27 }
 0x33c   : > { %v571_v28 = vpop.xlane.xlu1 %570 }
 0x33d   : > { %v579_v29 = vsub.f32 %v562_v9, %v571_v28 }
 0x33f   : > { %v584_v30 = vmul.f32 1.442695, %v579_v29 }
 0x341   : > { %2961 = vpow2.f32 %v584_v30 }
 0x343   : > { %v2960_v32 = vpop.eup %2959 }
 0x344   : > { %v574_v34 = vpop.xlane.xlu0 %573  ;;  %v590_v35 = vsel %vm565_vm5, %v2960_v32, 0.0 }
 0x345   : > { %591 = vadd.xlane.f32.xlu1 %v590_v35  ;;  %v580_v48 = vsub.f32 %v563_v21, %v574_v34 }
 0x347   : > { %v586_v49 = vmul.f32 1.442695, %v580_v48 }
 0x348   : > { %v577_v36 = vpop.xlane.xlu0 %576 }
 0x349   : > { %v581_v38 = vsub.f32 %v564_v23, %v577_v36 }
 0x34b   : > { %v2962_v41 = vpop.eup %2961  ;;  %v588_v44 = vmul.f32 1.442695, %v581_v38 }
 0x34c   : > { %v593_v45 = vsel %vm565_vm5, %v2962_v41, 0.0 }
 0x34d   : > { %2963 = vpow2.f32 %v588_v44  ;;  %594 = vadd.xlane.f32.xlu0 %v593_v45 }
 0x34e   : > { %2965 = vpow2.f32 %v586_v49 }
 0x356   : > { %807 = vrot.lane.b32.xlu1 %v3433_v33, %s3193_s23 }
 0x357   : > { %v2964_v46 = vpop.eup %2963 }
 0x358   : > { %v599_v47 = vsel %vm565_vm5, %v2964_v46, 0.0  ;;  %v2966_v50 = vpop.eup %2965 }
 0x359   : > { %600 = vadd.xlane.f32.xlu0 %v599_v47  ;;  %v596_v51 = vsel %vm565_vm5, %v2966_v50, 0.0 }
 0x35a   : > { %805 = vrot.lane.b32.xlu1 %v3433_v33, %s3194_s7 }
 0x36f   : > { %857 = vrot.lane.b32.xlu0 %v3436_v37, %s3193_s23 }
 0x373   : > { %907 = vrot.lane.b32.xlu0 %v3439_v39, %s3193_s23 }
 0x377   : > { %905 = vrot.lane.b32.xlu0 %v3439_v39, %s3194_s7 }
 0x37e   : > { %597 = vadd.xlane.f32.xlu1 %v596_v51 }
 0x38f   : > { %855 = vrot.lane.b32.xlu1 %v3436_v37, %s3194_s7 }
 0x393   : > { %957 = vrot.lane.b32.xlu1 %v3444_v42, %s3193_s23  ;;  %s3113_s23 = sshll.u32 %s3199_s21, 4  ;;  %s3114_s23 = int_to_ptr.vmem [resolvable:$false] %s3113_s23 }
 0x394   : > { %p3116_p5 = scmp.lt.s32.totalorder %s3765_s29, %s3114_s23 }
 0x397   : > { %955 = vrot.lane.b32.xlu1 %v3444_v42, %s3194_s7 }
 0x3d2   : > { %v592_v54 = vpop.xlane.xlu1 %591 }
 0x3d3   : > { %2967 = vrcp.f32 %v592_v54 }
 0x3d6   : > { %v808_v7 = vpop.permute.xlu1 %807 }
 0x3d7   : > { %v813_v16 = vsel %vm363_vm2, %v808_v7, 0 }
 0x3da   : > { %v595_v55 = vpop.xlane.xlu0 %594  ;;  %v806_v8 = vpop.permute.xlu1 %805 }
 0x3db   : > { %2969 = vrcp.f32 %v595_v55 }
 0x3dd   : > { %v2968_v56 = vpop.eup %2967 }
 0x3de   : > { %v606_v58 = vmul.f32 %v2968_v56, %v2960_v32 }
 0x3e0   : > { %v610_v59 = vpack.c.bf16 %v606_v58, %v606_v58 }
 0x3e2   : > { %2674 = vmatmul.mubr.msk.bf16.vlgmr.msra.gmra.mrb[12].mxu1 %vm565_vm5, %v610_v59 }
 0x3e3   : > { %2684 = vmatpush3.bf16.msra.mxu1 %v715_v60  ;;  %2685 = vmatprep.mubr.msk.bf16.mxu1 %vm3190_vm1, %v3189_v31 }
 0x3e4   : > { %2695 = vmatprep.subr.bf16.mxu1 %v3189_v31 }
 0x3e5   : > { %v2970_v62 = vpop.eup %2969 }
 0x3e6   : > { %v607_v40 = vmul.f32 %v2970_v62, %v2962_v41  ;;  %v601_v0 = vpop.xlane.xlu0 %600 }
 0x3e7   : > { %2971 = vrcp.f32 %v601_v0 }
 0x3e8   : > { %v611_v1 = vpack.c.bf16 %v607_v40, %v607_v40 }
 0x3ea   : > { %2680 = vmatmul.mubr.msk.bf16.vlgmr.msra.gmra.mrb[12].mxu0 %vm565_vm5, %v611_v1  ;;  %v858_v5 = vpop.permute.xlu0 %857 }
 0x3eb   : > { %2690 = vmatpush3.bf16.msra.mxu0 %v761_v2  ;;  %2691 = vmatprep.mubr.msk.bf16.mxu0 %vm3190_vm1, %v3189_v31  ;;  %v863_v6 = vsel %vm363_vm2, %v858_v5, 0 }
 0x3ec   : > { %2701 = vmatprep.subr.bf16.mxu0 %v3189_v31 }
 0x3ee   : > { %v908_v18 = vpop.permute.xlu0 %907 }
 0x3ef   : > { %v913_v19 = vsel %vm363_vm2, %v908_v18, 0 }
 0x3f1   : > { %v2972_v3 = vpop.eup %2971 }
 0x3f2   : > { %v609_v4 = vmul.f32 %v2972_v3, %v2964_v46  ;;  %v906_v20 = vpop.permute.xlu0 %905 }
 0x3f4   : > { %v613_v43 = vpack.c.bf16 %v609_v4, %v609_v4 }
 0x3f6   : > { %2692 = vmatmul.mubr.msk.bf16.vlgmr.msra.gmra.mrb[16].mxu0 %vm565_vm5, %v613_v43 }
 0x3f7   : > { %2702 = vmatpush3.bf16.xpose.msra.mxu0 %v863_v6  ;;  %2703 = vmatprep.mubr.msk.bf16.mxu0 %vm3190_vm1, %v3189_v31 }
 0x3f8   : > { %2713 = vmatprep.subr.bf16.mxu0 %v3189_v31 }
 0x40b   : > { %v598_v9 = vpop.xlane.xlu1 %597 }
 0x40c   : > { %2973 = vrcp.f32 %v598_v9 }
 0x40f   : > { %v856_v10 = vpop.permute.xlu1 %855 }
 0x410   : > { %2704 = vmatmul.mubr.msk.bf16.vlgmr.msra.gmra.mrb[20].mxu0 %vm363_vm2, %v856_v10 }
 0x411   : > { %2715 = vmatprep.mubr.msk.bf16.mxu0 %vm3190_vm1, %v3189_v31 }
 0x413   : > { %v958_v11 = vpop.permute.xlu1 %957 }
 0x414   : > { %v963_v12 = vsel %vm363_vm2, %v958_v11, 0 }
 0x415   : > { %2714 = vmatpush3.bf16.xpose.msra.mxu0 %v963_v12 }
 0x416   : > { %v2974_v13 = vpop.eup %2973  ;;  %2725 = vmatprep.subr.bf16.mxu0 %v3189_v31 }
 0x417   : > { %v608_v14 = vmul.f32 %v2974_v13, %v2966_v50  ;;  %v956_v17 = vpop.permute.xlu1 %955 }
 0x419   : > { %v612_v15 = vpack.c.bf16 %v608_v14, %v608_v14 }
 0x41b   : > { %2686 = vmatmul.mubr.msk.bf16.vlgmr.msra.gmra.mrb[16].mxu1 %vm565_vm5, %v612_v15 }
 0x41c   : > { %2696 = vmatpush3.bf16.xpose.msra.mxu1 %v813_v16  ;;  %2716 = vmatmul.mubr.msk.bf16.vlgmr.msra.gmra.mrb[24].mxu0 %vm363_vm2, %v956_v17 }
 0x41d   : > { %2697 = vmatprep.mubr.msk.bf16.mxu1 %vm3190_vm1, %v3189_v31  ;;  %2707 = vmatprep.subr.bf16.mxu1 %v3189_v31 }
 0x41e   : > { %2727 = vmatprep.mubr.msk.bf16.mxu0 %vm3190_vm1, %v3189_v31 }
 0x423   : > { %2698 = vmatmul.mubr.msk.bf16.vlgmr.msra.gmra.mrb[20].mxu1 %vm363_vm2, %v806_v8 }
 0x424   : > { %2708 = vmatpush3.bf16.xpose.msra.mxu1 %v913_v19  ;;  %2709 = vmatprep.mubr.msk.bf16.mxu1 %vm3190_vm1, %v3189_v31 }
 0x425   : > { %2719 = vmatprep.subr.bf16.mxu1 %v3189_v31 }
 0x42b   : > { %2710 = vmatmul.mubr.msk.bf16.vlgmr.msra.gmra.mrb[24].mxu1 %vm363_vm2, %v906_v20 }
 0x42c   : > { %2721 = vmatprep.mubr.msk.bf16.mxu1 %vm3190_vm1, %v3189_v31 }
 0x4b5   : > { %v3555_v21 = vpop.f32.mrb[12].mxu1 }
 0x4b6   : > { %v2675_v22 = vpop.f32.mrb[13].mxu1 }
 0x4b7   : > { %v662_v23 = vpop.f32.mrb[14].mxu1 }
 0x4b8   : > { %v2676_v24 = vpop.f32.mrb[15].mxu1 }
 0x4bd   : > { %v3557_v25 = vpop.f32.mrb[12].mxu0 }
 0x4be   : > { %v803_v26 = vpack.c.bf16 %v3557_v25, %v3555_v21  ;;  %v2681_v27 = vpop.f32.mrb[13].mxu0 }
 0x4bf   : > { %v708_v28 = vpop.f32.mrb[14].mxu0 }
 0x4c0   : > { %v2682_v29 = vpop.f32.mrb[15].mxu0 }
 0x4c9   : > { %v3561_v30 = vpop.f32.mrb[16].mxu0 }
 0x4ca   : > { %v2693_v32 = vpop.f32.mrb[17].mxu0 }
 0x4cb   : > { %v800_v34 = vpop.f32.mrb[18].mxu0 }
 0x4cc   : > { %v2694_v35 = vpop.f32.mrb[19].mxu0 }
 0x4e3   : > { %v899_v36 = vpop.f32.mrb[20].mxu0 }
 0x4e4   : > { %v1006_v38 = vmul.f32 0.125, %v899_v36  ;;  %v2705_v41 = vpop.f32.mrb[21].mxu0 }
 0x4e5   : > { %v902_v44 = vpop.f32.mrb[22].mxu0 }
 0x4e6   : > { %v2706_v45 = vpop.f32.mrb[23].mxu0  ;;  %v1010_v46 = vadd.f32 %v1006_v38, %v3483_v61 }
 0x4e8   : > { %v1016_v47 = vsel %vm565_vm5, %v1010_v46, -inf }
 0x4e9   : > { %1017 = vmax.xlane.f32.xlu1 %v1016_v47 }
 0x4ee   : > { %v3565_v48 = vpop.f32.mrb[16].mxu1 }
 0x4ef   : > { %v804_v49 = vpack.c.bf16 %v3561_v30, %v3565_v48  ;;  %v2687_v50 = vpop.f32.mrb[17].mxu1  ;;  %v999_v51 = vpop.f32.mrb[24].mxu0 }
 0x4f0   : > { %v754_v54 = vpop.f32.mrb[18].mxu1  ;;  %v2717_v55 = vpop.f32.mrb[25].mxu0  ;;  %v1008_v5 = vmul.f32 0.125, %v999_v51 }
 0x4f1   : > { %v2688_v56 = vpop.f32.mrb[19].mxu1  ;;  %v1002_v58 = vpop.f32.mrb[26].mxu0 }
 0x4f2   : > { %v2718_v59 = vpop.f32.mrb[27].mxu0  ;;  %v1012_v11 = vadd.f32 %v1008_v5, %v3483_v61 }
 0x4f4   : > { %v1022_v12 = vsel %vm565_vm5, %v1012_v11, -inf }
 0x4f6   : > { %v849_v60 = vpop.f32.mrb[20].mxu1 }
 0x4f7   : > { %v1005_v62 = vmul.f32 0.125, %v849_v60  ;;  %v2699_v40 = vpop.f32.mrb[21].mxu1 }
 0x4f8   : > { %v852_v0 = vpop.f32.mrb[22].mxu1 }
 0x4f9   : > { %v2700_v1 = vpop.f32.mrb[23].mxu1  ;;  %v1009_v2 = vadd.f32 %v1005_v62, %v3483_v61 }
 0x4fa   : > { %1062 = vrot.lane.b32.xlu1 %v3467_v53, %s3194_s7 }
 0x4fb   : > { %v1013_v3 = vsel %vm565_vm5, %v1009_v2, -inf }
 0x4fc   : > { %1014 = vmax.xlane.f32.xlu0 %v1013_v3 }
 0x4fe   : > { %v949_v4 = vpop.f32.mrb[24].mxu1 }
 0x4ff   : > { %v1007_v43 = vmul.f32 0.125, %v949_v4  ;;  %v2711_v6 = vpop.f32.mrb[25].mxu1 }
 0x500   : > { %v952_v7 = vpop.f32.mrb[26].mxu1 }
 0x501   : > { %v2712_v8 = vpop.f32.mrb[27].mxu1  ;;  %v1011_v9 = vadd.f32 %v1007_v43, %v3483_v61 }
 0x503   : > { %v1019_v10 = vsel %vm565_vm5, %v1011_v9, -inf }
 0x504   : > { %1020 = vmax.xlane.f32.xlu0 %v1019_v10 }
 0x508   : > { %1023 = vmax.xlane.f32.xlu0 %v1022_v12 }
 0x576   : > { %v1018_v13 = vpop.xlane.xlu1 %1017 }
 0x577   : > { %v1026_v14 = vsub.f32 %v1010_v46, %v1018_v13 }
 0x579   : > { %v1031_v15 = vmul.f32 1.442695, %v1026_v14 }
 0x57a   : > { %v1063_v16 = vpop.permute.xlu1 %1062 }
 0x57b   : > { %2975 = vpow2.f32 %v1031_v15  ;;  %v1068_v17 = vsel %vm621_vm3, %v1063_v16, 0 }
 0x57c   : > { %2720 = vmatpush3.bf16.msra.mxu1 %v1068_v17 }
 0x57d   : > { %2731 = vmatprep.subr.bf16.mxu1 %v3189_v31 }
 0x585   : > { %v2976_v18 = vpop.eup %2975 }
 0x586   : > { %v1040_v19 = vsel %vm565_vm5, %v2976_v18, 0.0 }
 0x587   : > { %1041 = vadd.xlane.f32.xlu0 %v1040_v19  ;;  %v281_v19 = vld [vmem:[#allocation7 + $0x18] sm:$0xff] }
 0x589   : > { %v1015_v20 = vpop.xlane.xlu0 %1014 }
 0x58a   : > { %v1025_v22 = vsub.f32 %v1009_v2, %v1015_v20 }
 0x58c   : > { %v1029_v23 = vmul.f32 1.442695, %v1025_v22  ;;  %v278_v22 = vld [vmem:[#allocation7] sm:$0xff] }
 0x58e   : > { %2977 = vpow2.f32 %v1029_v23  ;;  %v279_v23 = vld [vmem:[#allocation7 + $0x8] sm:$0xff] }
 0x591   : > { %v1021_v24 = vpop.xlane.xlu0 %1020 }
 0x592   : > { %v1027_v27 = vsub.f32 %v1011_v9, %v1021_v24  ;;  %v286_v24 = vpack.c.bf16 %v279_v23, %v278_v22 }
 0x594   : > { %v1033_v28 = vmul.f32 1.442695, %v1027_v27 }
 0x595   : > { %v1024_v29 = vpop.xlane.xlu0 %1023 }
 0x596   : > { %2979 = vpow2.f32 %v1033_v28  ;;  %v1028_v32 = vsub.f32 %v1012_v11, %v1024_v29 }
 0x598   : > { %v2978_v34 = vpop.eup %2977  ;;  %v1035_v35 = vmul.f32 1.442695, %v1028_v32 }
 0x599   : > { %v1037_v36 = vsel %vm565_vm5, %v2978_v34, 0.0 }
 0x59a   : > { %2981 = vpow2.f32 %v1035_v35  ;;  %1038 = vadd.xlane.f32.xlu1 %v1037_v36 }
 0x5a0   : > { %v2980_v38 = vpop.eup %2979 }
 0x5a1   : > { %v1043_v41 = vsel %vm565_vm5, %v2980_v38, 0.0 }
 0x5a2   : > { %1044 = vadd.xlane.f32.xlu1 %v1043_v41 }
 0x5a4   : > { %v2982_v44 = vpop.eup %2981 }
 0x5a5   : > { %v1046_v45 = vsel %vm565_vm5, %v2982_v44, 0.0 }
 0x5a6   : > { %1047 = vadd.xlane.f32.xlu0 %v1046_v45 }
 0x5b3   : > { %1160 = vrot.lane.b32.xlu1 %v3511_v57, %s3194_s7 }
 0x5b7   : > { %1209 = vrot.lane.b32.xlu1 %v3521_v63, %s3194_s7 }
 0x5bb   : > { %1369 = vrot.lane.b32.xlu1 %v3433_v33, %s3195_s8 }
 0x5bc   : > { %1111 = vrot.lane.b32.xlu0 %v3460_v52, %s3194_s7  ;;  %s3115_s7 = scalar_lea.vmem %s3114_s23, 1024 }
 0x5bd   : > { %p3117_p9 = scmp.lt.s32.totalorder %s3115_s7, %s3109_s25 }
 0x5bf   : > { %1419 = vrot.lane.b32.xlu1 %v3436_v37, %s3195_s8  ;;  %p3118_p12 = por %p3117_p9, %p3116_p5 }
 0x5c0   : > { %1371 = vrot.lane.b32.xlu0 %v3433_v33, %s3196_s30 }
 0x5c1   : > { %p3119_p2 = pnand %p3118_p12, %p3112_p3 }
 0x5c3   : > { %1521 = vrot.lane.b32.xlu1 %v3444_v42, %s3196_s30 }
 0x5c4   : > { %1421 = vrot.lane.b32.xlu0 %v3436_v37, %s3196_s30 }
 0x5c7   : > { %1519 = vrot.lane.b32.xlu1 %v3444_v42, %s3195_s8 }
 0x5c8   : > { %1471 = vrot.lane.b32.xlu0 %v3439_v39, %s3196_s30 }
 0x5cc   : > { %1469 = vrot.lane.b32.xlu0 %v3439_v39, %s3195_s8 }
 0x614   : > { %v1042_v46 = vpop.xlane.xlu0 %1041 }
 0x627   : > { %v1039_v47 = vpop.xlane.xlu1 %1038 }
 0x628   : > { %2983 = vrcp.f32 %v1039_v47 }
 0x629   : > { %2985 = vrcp.f32 %v1042_v46 }
 0x62f   : > { %v1045_v50 = vpop.xlane.xlu1 %1044 }
 0x630   : > { %2987 = vrcp.f32 %v1045_v50 }
 0x632   : > { %v2984_v51 = vpop.eup %2983 }
 0x633   : > { %v2986_v54 = vpop.eup %2985  ;;  %v1053_v55 = vmul.f32 %v2984_v51, %v2978_v34  ;;  %v1161_v56 = vpop.permute.xlu1 %1160 }
 0x634   : > { %v1048_v58 = vpop.xlane.xlu0 %1047  ;;  %v1054_v60 = vmul.f32 %v2986_v54, %v2976_v18  ;;  %v1166_v62 = vsel %vm621_vm3, %v1161_v56, 0  ;;  %v280_v18 = vld [vmem:[#allocation7 + $0x10] sm:$0xff] }
 0x635   : > { %2989 = vrcp.f32 %v1048_v58  ;;  %v1057_v59 = vpack.c.bf16 %v1053_v55, %v1053_v55  ;;  %v287_v20 = vpack.c.bf16 %v281_v19, %v280_v18 }
 0x636   : > { %v1058_v3 = vpack.c.bf16 %v1054_v60, %v1054_v60 }
 0x637   : > { %2722 = vmatmul.mubr.msk.bf16.vlgmr.msra.gmra.mrb[28].mxu1 %vm565_vm5, %v1057_v59  ;;  %v1210_v1 = vpop.permute.xlu1 %1209 }
 0x638   : > { %v1112_v40 = vpop.permute.xlu0 %1111  ;;  %2732 = vmatpush3.bf16.msra.mxu1 %v1166_v62  ;;  %2733 = vmatprep.mubr.msk.bf16.mxu1 %vm3190_vm1, %v3189_v31  ;;  %v1215_v5 = vsel %vm621_vm3, %v1210_v1, 0 }
 0x639   : > { %v1117_v0 = vsel %vm621_vm3, %v1112_v40, 0  ;;  %2743 = vmatprep.subr.bf16.mxu1 %v287_v20 }
 0x63a   : > { %2726 = vmatpush3.bf16.msra.mxu0 %v1117_v0  ;;  %v2988_v2 = vpop.eup %2987 }
 0x63b   : > { %2737 = vmatprep.subr.bf16.mxu0 %v3189_v31  ;;  %v1055_v4 = vmul.f32 %v2988_v2, %v2980_v38  ;;  %v1370_v11 = vpop.permute.xlu1 %1369 }
 0x63c   : > { %v1372_v9 = vpop.permute.xlu0 %1371 }
 0x63d   : > { %2728 = vmatmul.mubr.msk.bf16.vlgmr.msra.gmra.mrb[28].mxu0 %vm565_vm5, %v1058_v3  ;;  %v1059_v43 = vpack.c.bf16 %v1055_v4, %v1055_v4  ;;  %v1377_v10 = vsel %vm363_vm2, %v1372_v9, 0 }
 0x63e   : > { %2738 = vmatpush3.bf16.msra.mxu0 %v1215_v5  ;;  %2739 = vmatprep.mubr.msk.bf16.mxu0 %vm3190_vm1, %v3189_v31 }
 0x63f   : > { %v2990_v6 = vpop.eup %2989  ;;  %2755 = vmatprep.subr.bf16.mxu0 %v3189_v31  ;;  %2734 = vmatmul.mubr.msk.bf16.vlgmr.msra.gmra.mrb[32].mxu1 %vm565_vm5, %v1059_v43  ;;  %v1420_v13 = vpop.permute.xlu1 %1419 }
 0x640   : > { %v1056_v7 = vmul.f32 %v2990_v6, %v2982_v44  ;;  %v1422_v12 = vpop.permute.xlu0 %1421  ;;  %2744 = vmatpush3.bf16.msra.mxu1 %v287_v20 }
 0x641   : > { %v1427_v14 = vsel %vm363_vm2, %v1422_v12, 0  ;;  %2749 = vmatprep.subr.bf16.mxu1 %v286_v24 }
 0x642   : > { %v1060_v8 = vpack.c.bf16 %v1056_v7, %v1056_v7 }
 0x643   : > { %v1522_v15 = vpop.permute.xlu1 %1521 }
 0x644   : > { %v1527_v16 = vsel %vm363_vm2, %v1522_v15, 0  ;;  %v1472_v40 = vpop.permute.xlu0 %1471 }
 0x645   : > { %2740 = vmatmul.mubr.msk.bf16.vlgmr.msra.gmra.mrb[32].mxu0 %vm565_vm5, %v1060_v8  ;;  %v1477_v3 = vsel %vm363_vm2, %v1472_v40, 0 }
 0x646   : > { %2757 = vmatprep.mubr.msk.bf16.mxu0 %vm3190_vm1, %v3189_v31 }
 0x647   : > { %2756 = vmatpush3.bf16.xpose.msra.mxu0 %v1377_v10  ;;  %v1520_v17 = vpop.permute.xlu1 %1519 }
 0x648   : > { %2761 = vmatprep.subr.bf16.mxu0 %v3189_v31  ;;  %v1470_v6 = vpop.permute.xlu0 %1469 }
 0x64e   : > { %2758 = vmatmul.mubr.msk.bf16.vlgmr.msra.gmra.mrb[36].mxu0 %vm363_vm2, %v1370_v11 }
 0x64f   : > { %2762 = vmatpush3.bf16.xpose.msra.mxu0 %v1427_v14  ;;  %2763 = vmatprep.mubr.msk.bf16.mxu0 %vm3190_vm1, %v3189_v31 }
 0x650   : > { %2773 = vmatprep.subr.bf16.mxu0 %v3189_v31 }
 0x656   : > { %2764 = vmatmul.mubr.msk.bf16.vlgmr.msra.gmra.mrb[40].mxu0 %vm363_vm2, %v1420_v13 }
 0x657   : > { %2774 = vmatpush3.bf16.xpose.msra.mxu0 %v1527_v16  ;;  %2775 = vmatprep.mubr.msk.bf16.mxu0 %vm3190_vm1, %v3189_v31 }
 0x658   : > { %2785 = vmatprep.subr.bf16.mxu0 %v3189_v31 }
 0x65e   : > { %2776 = vmatmul.mubr.msk.bf16.vlgmr.msra.gmra.mrb[44].mxu0 %vm363_vm2, %v1520_v17 }
 0x65f   : > { %2787 = vmatprep.mubr.msk.bf16.mxu0 %vm3190_vm1, %v3189_v31 }
 0x70a   : > { %v1104_v27 = vpop.f32.mrb[28].mxu1 }
 0x70b   : > { %v2723_v28 = vpop.f32.mrb[29].mxu1 }
 0x70c   : > { %v1107_v29 = vpop.f32.mrb[30].mxu1 }
 0x70d   : > { %v2724_v32 = vpop.f32.mrb[31].mxu1 }
 0x710   : > { %v1153_v34 = vpop.f32.mrb[28].mxu0 }
 0x711   : > { %v1257_v35 = vpack.c.bf16 %v1153_v34, %v1104_v27  ;;  %v2729_v36 = vpop.f32.mrb[29].mxu0 }
 0x712   : > { %v1156_v38 = vpop.f32.mrb[30].mxu0  ;;  %v1202_v44 = vpop.f32.mrb[32].mxu1 }
 0x713   : > { %v2730_v41 = vpop.f32.mrb[31].mxu0  ;;  %2745 = vmatprep.mubr.msk.bf16.mxu1 %vm363_vm2, %v1257_v35  ;;  %v2735_v45 = vpop.f32.mrb[33].mxu1 }
 0x714   : > { %v1205_v46 = vpop.f32.mrb[34].mxu1 }
 0x715   : > { %v2736_v47 = vpop.f32.mrb[35].mxu1 }
 0x718   : > { %v1251_v50 = vpop.f32.mrb[32].mxu0 }
 0x719   : > { %v1258_v51 = vpack.c.bf16 %v1251_v50, %v1202_v44  ;;  %v2741_v54 = vpop.f32.mrb[33].mxu0 }
 0x71a   : > { %v1254_v55 = vpop.f32.mrb[34].mxu0 }
 0x71b   : > { %v2742_v56 = vpop.f32.mrb[35].mxu0  ;;  %2746 = vmatmul.mubr.msk.bf16.vlgmr.msra.gmra.mrb[36].mxu1 %vm363_vm2, %v1258_v51 }
 0x71c   : > { %2751 = vmatprep.mubr.msk.bf16.mxu1 %vm363_vm2, %v803_v26  ;;  %2750 = vmatpush3.bf16.msra.mxu1 %v286_v24 }
 0x71d   : > { %2767 = vmatprep.subr.bf16.mxu1 %v3189_v31 }
 0x721   : > { %v1413_v58 = vpop.f32.mrb[36].mxu0 }
 0x722   : > { %v1569_v59 = vmul.f32 0.125, %v1413_v58  ;;  %v2759_v60 = vpop.f32.mrb[37].mxu0 }
 0x723   : > { %v1416_v62 = vpop.f32.mrb[38].mxu0 }
 0x724   : > { %v2760_v0 = vpop.f32.mrb[39].mxu0  ;;  %v1573_v1 = vadd.f32 %v1569_v59, %v3483_v61 }
 0x726   : > { %v1577_v2 = vsel %vm565_vm5, %v1573_v1, -inf }
 0x727   : > { %2752 = vmatmul.mubr.msk.bf16.vlgmr.msra.gmra.mrb[36].mxu1 %vm363_vm2, %v804_v49  ;;  %1578 = vmax.xlane.f32.xlu0 %v1577_v2 }
 0x728   : > { %2768 = vmatpush3.bf16.xpose.msra.mxu1 %v1477_v3  ;;  %2769 = vmatprep.mubr.msk.bf16.mxu1 %vm3190_vm1, %v3189_v31 }
 0x729   : > { %v1463_v21 = vpop.f32.mrb[40].mxu0  ;;  %2779 = vmatprep.subr.bf16.mxu1 %v3189_v31 }
 0x72a   : > { %v1570_v25 = vmul.f32 0.125, %v1463_v21  ;;  %v2765_v26 = vpop.f32.mrb[41].mxu0 }
 0x72b   : > { %v1466_v4 = vpop.f32.mrb[42].mxu0 }
 0x72c   : > { %v2766_v5 = vpop.f32.mrb[43].mxu0  ;;  %v1574_v43 = vadd.f32 %v1570_v25, %v3483_v61 }
 0x72e   : > { %v1580_v7 = vsel %vm565_vm5, %v1574_v43, -inf }
 0x72f   : > { %2770 = vmatmul.mubr.msk.bf16.vlgmr.msra.gmra.mrb[40].mxu1 %vm363_vm2, %v1470_v6  ;;  %1581 = vmax.xlane.f32.xlu1 %v1580_v7 }
 0x730   : > { %2781 = vmatprep.mubr.msk.bf16.mxu1 %vm3190_vm1, %v3189_v31 }
 0x731   : > { %v1563_v30 = vpop.f32.mrb[44].mxu0 }
 0x732   : > { %v2777_v48 = vpop.f32.mrb[45].mxu0  ;;  %v1572_v18 = vmul.f32 0.125, %v1563_v30 }
 0x733   : > { %v1566_v49 = vpop.f32.mrb[46].mxu0 }
 0x734   : > { %v2778_v8 = vpop.f32.mrb[47].mxu0  ;;  %v1576_v28 = vadd.f32 %v1572_v18, %v3483_v61 }
 0x736   : > { %v1586_v29 = vsel %vm565_vm5, %v1576_v28, -inf }
 0x7b4   : > { %v1579_v9 = vpop.xlane.xlu0 %1578 }
 0x7b5   : > { %v1589_v10 = vsub.f32 %v1573_v1, %v1579_v9 }
 0x7b7   : > { %v1593_v11 = vmul.f32 1.442695, %v1589_v10 }
 0x7b9   : > { %2991 = vpow2.f32 %v1593_v11 }
 0x7bc   : > { %v1582_v14 = vpop.xlane.xlu1 %1581 }
 0x7bd   : > { %v1590_v15 = vsub.f32 %v1574_v43, %v1582_v14 }
 0x7bf   : > { %v1595_v16 = vmul.f32 1.442695, %v1590_v15  ;;  %v282_v15 = vld [vmem:[#allocation7 + $0x20] sm:$0xff] }
 0x7c1   : > { %2993 = vpow2.f32 %v1595_v16  ;;  %v283_v16 = vld [vmem:[#allocation7 + $0x28] sm:$0xff] }
 0x7c3   : > { %v2992_v12 = vpop.eup %2991 }
 0x7c4   : > { %v1601_v13 = vsel %vm565_vm5, %v2992_v12, 0.0 }
 0x7c5   : > { %1602 = vadd.xlane.f32.xlu1 %v1601_v13 }
 0x7cb   : > { %v2994_v32 = vpop.eup %2993 }
 0x7cc   : > { %v1604_v34 = vsel %vm565_vm5, %v2994_v32, 0.0 }
 0x7d6   : > { %1625 = vrot.lane.b32.xlu1 %v3467_v53, %s3195_s8 }
 0x7da   : > { %1721 = vrot.lane.b32.xlu1 %v3511_v57, %s3195_s8 }
 0x802   : > { %v1513_v17 = vpop.f32.mrb[40].mxu1 }
 0x803   : > { %v1571_v19 = vmul.f32 0.125, %v1513_v17  ;;  %v2771_v20 = vpop.f32.mrb[41].mxu1  ;;  %v288_v17 = vpack.c.bf16 %v283_v16, %v282_v15 }
 0x804   : > { %v1516_v22 = vpop.f32.mrb[42].mxu1 }
 0x805   : > { %v2772_v23 = vpop.f32.mrb[43].mxu1  ;;  %v1575_v24 = vadd.f32 %v1571_v19, %v3483_v61 }
 0x807   : > { %v1583_v27 = vsel %vm565_vm5, %v1575_v24, -inf }
 0x808   : > { %1584 = vmax.xlane.f32.xlu0 %v1583_v27 }
 0x80c   : > { %1587 = vmax.xlane.f32.xlu0 %v1586_v29 }
 0x810   : > { %1605 = vadd.xlane.f32.xlu0 %v1604_v34 }
 0x852   : > { %v1603_v35 = vpop.xlane.xlu1 %1602 }
 0x853   : > { %2995 = vrcp.f32 %v1603_v35 }
 0x856   : > { %v1626_v36 = vpop.permute.xlu1 %1625 }
 0x857   : > { %v1631_v38 = vsel %vm621_vm3, %v1626_v36, 0 }
 0x858   : > { %2780 = vmatpush3.bf16.msra.mxu1 %v1631_v38 }
 0x859   : > { %2791 = vmatprep.subr.bf16.mxu1 %v3189_v31 }
 0x85a   : > { %v1722_v45 = vpop.permute.xlu1 %1721 }
 0x85b   : > { %v1727_v47 = vsel %vm621_vm3, %v1722_v45, 0 }
 0x85d   : > { %v2996_v41 = vpop.eup %2995 }
 0x85e   : > { %v1617_v44 = vmul.f32 %v2996_v41, %v2992_v12 }
 0x860   : > { %v1621_v46 = vpack.c.bf16 %v1617_v44, %v1617_v44 }
 0x862   : > { %2782 = vmatmul.mubr.msk.bf16.vlgmr.msra.gmra.mrb[44].mxu1 %vm565_vm5, %v1621_v46 }
 0x863   : > { %2792 = vmatpush3.bf16.msra.mxu1 %v1727_v47  ;;  %2793 = vmatprep.mubr.msk.bf16.mxu1 %vm3190_vm1, %v3189_v31 }
 0x864   : > { %2803 = vmatprep.subr.bf16.mxu1 %v288_v17 }
 0x895   : > { %v1585_v50 = vpop.xlane.xlu0 %1584 }
 0x896   : > { %v1591_v51 = vsub.f32 %v1575_v24, %v1585_v50 }
 0x898   : > { %v1597_v54 = vmul.f32 1.442695, %v1591_v51 }
 0x899   : > { %v1588_v55 = vpop.xlane.xlu0 %1587 }
 0x89a   : > { %2997 = vpow2.f32 %v1597_v54  ;;  %v1592_v56 = vsub.f32 %v1576_v28, %v1588_v55 }
 0x89c   : > { %v1599_v58 = vmul.f32 1.442695, %v1592_v56 }
 0x89d   : > { %v1606_v0 = vpop.xlane.xlu0 %1605 }
 0x89e   : > { %2999 = vpow2.f32 %v1599_v58 }
 0x89f   : > { %3001 = vrcp.f32 %v1606_v0 }
 0x8a4   : > { %v2998_v59 = vpop.eup %2997 }
 0x8a5   : > { %v1607_v60 = vsel %vm565_vm5, %v2998_v59, 0.0 }
 0x8a6   : > { %1608 = vadd.xlane.f32.xlu1 %v1607_v60 }
 0x8a8   : > { %v3000_v62 = vpop.eup %2999 }
 0x8a9   : > { %v1610_v40 = vsel %vm565_vm5, %v3000_v62, 0.0  ;;  %v3002_v21 = vpop.eup %3001 }
 0x8aa   : > { %1611 = vadd.xlane.f32.xlu0 %v1610_v40 }
 0x8b7   : > { %1769 = vrot.lane.b32.xlu1 %v3521_v63, %s3195_s8 }
 0x8bb   : > { %1930 = vrot.lane.b32.xlu1 %v3436_v37, %s3197_s6 }
 0x8bf   : > { %1928 = vrot.lane.b32.xlu1 %v3436_v37, %s3198_s9 }
 0x8c0   : > { %1673 = vrot.lane.b32.xlu0 %v3460_v52, %s3195_s8 }
 0x8c3   : > { %2030 = vrot.lane.b32.xlu1 %v3444_v42, %s3197_s6 }
 0x8c4   : > { %1880 = vrot.lane.b32.xlu0 %v3433_v33, %s3197_s6 }
 0x8c7   : > { %2028 = vrot.lane.b32.xlu1 %v3444_v42, %s3198_s9  ;;  %v1618_v42 = vmul.f32 %v3002_v21, %v2994_v32 }
 0x8c8   : > { %1878 = vrot.lane.b32.xlu0 %v3433_v33, %s3198_s9 }
 0x8cc   : > { %1980 = vrot.lane.b32.xlu0 %v3439_v39, %s3197_s6 }
 0x8d0   : > { %1978 = vrot.lane.b32.xlu0 %v3439_v39, %s3198_s9  ;;  %v1622_v39 = vpack.c.bf16 %v1618_v42, %v1618_v42 }
 0x933   : > { %v1609_v37 = vpop.xlane.xlu1 %1608 }
 0x934   : > { %3003 = vrcp.f32 %v1609_v37 }
 0x935   : > { %v1667_v1 = vpop.f32.mrb[44].mxu1 }
 0x936   : > { %v2783_v2 = vpop.f32.mrb[45].mxu1 }
 0x937   : > { %v1670_v3 = vpop.f32.mrb[46].mxu1  ;;  %v1612_v25 = vpop.xlane.xlu0 %1611 }
 0x938   : > { %v2784_v26 = vpop.f32.mrb[47].mxu1  ;;  %3005 = vrcp.f32 %v1612_v25  ;;  %v1770_v43 = vpop.permute.xlu1 %1769 }
 0x939   : > { %v1775_v7 = vsel %vm621_vm3, %v1770_v43, 0 }
 0x93b   : > { %v1674_v4 = vpop.permute.xlu0 %1673 }
 0x93c   : > { %v1679_v33 = vsel %vm621_vm3, %v1674_v4, 0  ;;  %v1931_v28 = vpop.permute.xlu1 %1930 }
 0x93d   : > { %2786 = vmatpush3.bf16.msra.mxu0 %v1679_v33  ;;  %v1936_v44 = vsel %vm363_vm2, %v1931_v28, 0 }
 0x93e   : > { %v3004_v5 = vpop.eup %3003  ;;  %2797 = vmatprep.subr.bf16.mxu0 %v3189_v31 }
 0x93f   : > { %v1619_v6 = vmul.f32 %v3004_v5, %v2998_v59  ;;  %v1881_v49 = vpop.permute.xlu0 %1880 }
 0x940   : > { %2788 = vmatmul.mubr.msk.bf16.vlgmr.msra.gmra.mrb[48].mxu0 %vm565_vm5, %v1622_v39  ;;  %v1886_v11 = vsel %vm363_vm2, %v1881_v49, 0  ;;  %v1929_v38 = vpop.permute.xlu1 %1928 }
 0x941   : > { %v1623_v30 = vpack.c.bf16 %v1619_v6, %v1619_v6  ;;  %2798 = vmatpush3.bf16.msra.mxu0 %v1775_v7  ;;  %2799 = vmatprep.mubr.msk.bf16.mxu0 %vm3190_vm1, %v3189_v31 }
 0x942   : > { %v3006_v48 = vpop.eup %3005  ;;  %2809 = vmatprep.subr.bf16.mxu0 %v3189_v31 }
 0x943   : > { %2794 = vmatmul.mubr.msk.bf16.vlgmr.msra.gmra.mrb[48].mxu1 %vm565_vm5, %v1623_v30  ;;  %v1620_v8 = vmul.f32 %v3006_v48, %v3000_v62  ;;  %v1879_v10 = vpop.permute.xlu0 %1878 }
 0x944   : > { %2804 = vmatpush3.bf16.msra.mxu1 %v288_v17  ;;  %v2031_v46 = vpop.permute.xlu1 %2030 }
 0x945   : > { %v1624_v9 = vpack.c.bf16 %v1620_v8, %v1620_v8  ;;  %2815 = vmatprep.subr.bf16.mxu1 %v3189_v31  ;;  %v2036_v54 = vsel %vm363_vm2, %v2031_v46, 0 }
 0x947   : > { %v1981_v12 = vpop.permute.xlu0 %1980 }
 0x948   : > { %2800 = vmatmul.mubr.msk.bf16.vlgmr.msra.gmra.mrb[52].mxu0 %vm565_vm5, %v1624_v9  ;;  %v1986_v13 = vsel %vm363_vm2, %v1981_v12, 0  ;;  %v2029_v62 = vpop.permute.xlu1 %2028 }
 0x949   : > { %2811 = vmatprep.mubr.msk.bf16.mxu0 %vm3190_vm1, %v3189_v31 }
 0x94a   : > { %2810 = vmatpush3.bf16.xpose.msra.mxu0 %v1886_v11 }
 0x94b   : > { %2821 = vmatprep.subr.bf16.mxu0 %v3189_v31  ;;  %v1979_v14 = vpop.permute.xlu0 %1978 }
 0x951   : > { %2812 = vmatmul.mubr.msk.bf16.vlgmr.msra.gmra.mrb[56].mxu0 %vm363_vm2, %v1879_v10 }
 0x952   : > { %2822 = vmatpush3.bf16.xpose.msra.mxu0 %v1986_v13  ;;  %2823 = vmatprep.mubr.msk.bf16.mxu0 %vm3190_vm1, %v3189_v31 }
 0x953   : > { %2833 = vmatprep.subr.bf16.mxu0 %v3189_v31 }
 0x959   : > { %2824 = vmatmul.mubr.msk.bf16.vlgmr.msra.gmra.mrb[60].mxu0 %vm363_vm2, %v1979_v14 }
 0x95a   : > { %2835 = vmatprep.mubr.msk.bf16.mxu0 %vm3190_vm1, %v3189_v31 }
 0xa13   : > { %v1715_v18 = vpop.f32.mrb[48].mxu0 }
 0xa14   : > { %v1817_v19 = vpack.c.bf16 %v1715_v18, %v1667_v1  ;;  %v2789_v20 = vpop.f32.mrb[49].mxu0 }
 0xa15   : > { %v1718_v22 = vpop.f32.mrb[50].mxu0 }
 0xa16   : > { %v1763_v23 = vpop.f32.mrb[48].mxu1  ;;  %v2790_v24 = vpop.f32.mrb[51].mxu0  ;;  %2805 = vmatprep.mubr.msk.bf16.mxu1 %vm363_vm2, %v1817_v19 }
 0xa17   : > { %v2795_v27 = vpop.f32.mrb[49].mxu1 }
 0xa18   : > { %v1766_v29 = vpop.f32.mrb[50].mxu1 }
 0xa19   : > { %v2796_v32 = vpop.f32.mrb[51].mxu1 }
 0xa1b   : > { %v1811_v34 = vpop.f32.mrb[52].mxu0 }
 0xa1c   : > { %v1818_v35 = vpack.c.bf16 %v1811_v34, %v1763_v23  ;;  %v2801_v36 = vpop.f32.mrb[53].mxu0 }
 0xa1d   : > { %v1814_v41 = vpop.f32.mrb[54].mxu0 }
 0xa1e   : > { %v2802_v45 = vpop.f32.mrb[55].mxu0  ;;  %2806 = vmatmul.mubr.msk.bf16.vlgmr.msra.gmra.mrb[36].mxu1 %vm363_vm2, %v1818_v35 }
 0xa1f   : > { %2816 = vmatpush3.bf16.xpose.msra.mxu1 %v1936_v44  ;;  %2817 = vmatprep.mubr.msk.bf16.mxu1 %vm3190_vm1, %v3189_v31 }
 0xa20   : > { %2827 = vmatprep.subr.bf16.mxu1 %v3189_v31 }
 0xa24   : > { %v1922_v47 = vpop.f32.mrb[56].mxu0 }
 0xa25   : > { %v2078_v50 = vmul.f32 0.125, %v1922_v47  ;;  %v2813_v51 = vpop.f32.mrb[57].mxu0 }
 0xa26   : > { %v1925_v55 = vpop.f32.mrb[58].mxu0  ;;  %2818 = vmatmul.mubr.msk.bf16.vlgmr.msra.gmra.mrb[52].mxu1 %vm363_vm2, %v1929_v38 }
 0xa27   : > { %2828 = vmatpush3.bf16.xpose.msra.mxu1 %v2036_v54  ;;  %v2814_v56 = vpop.f32.mrb[59].mxu0  ;;  %v2082_v58 = vadd.f32 %v2078_v50, %v3483_v61  ;;  %2829 = vmatprep.mubr.msk.bf16.mxu1 %vm3190_vm1, %v3189_v31 }
 0xa28   : > { %2839 = vmatprep.subr.bf16.mxu1 %v3189_v31 }
 0xa29   : > { %v2086_v59 = vsel %vm565_vm5, %v2082_v58, -inf }
 0xa2a   : > { %2087 = vmax.xlane.f32.xlu0 %v2086_v59 }
 0xa2c   : > { %v2022_v60 = vpop.f32.mrb[60].mxu0 }
 0xa2d   : > { %v2080_v40 = vmul.f32 0.125, %v2022_v60  ;;  %v2825_v0 = vpop.f32.mrb[61].mxu0 }
 0xa2e   : > { %v2025_v37 = vpop.f32.mrb[62].mxu0  ;;  %2830 = vmatmul.mubr.msk.bf16.vlgmr.msra.gmra.mrb[56].mxu1 %vm363_vm2, %v2029_v62 }
 0xa2f   : > { %v2826_v1 = vpop.f32.mrb[63].mxu0  ;;  %v2084_v2 = vadd.f32 %v2080_v40, %v3483_v61  ;;  %2841 = vmatprep.mubr.msk.bf16.mxu1 %vm3190_vm1, %v3189_v31 }
 0xa31   : > { %v2092_v3 = vsel %vm565_vm5, %v2084_v2, -inf }
 0xa32   : > { %2093 = vmax.xlane.f32.xlu0 %v2092_v3 }
 0xab7   : > { %v2088_v21 = vpop.xlane.xlu0 %2087 }
 0xab8   : > { %v2098_v25 = vsub.f32 %v2082_v58, %v2088_v21 }
 0xaba   : > { %v2102_v42 = vmul.f32 1.442695, %v2098_v25 }
 0xabc   : > { %3007 = vpow2.f32 %v2102_v42  ;;  %v284_v42 = vld [vmem:[#allocation7 + $0x30] sm:$0xff] }
 0xabf   : > { %v2094_v26 = vpop.xlane.xlu0 %2093 }
 0xac0   : > { %v2100_v4 = vsub.f32 %v2084_v2, %v2094_v26 }
 0xac2   : > { %v2106_v33 = vmul.f32 1.442695, %v2100_v4  ;;  %v285_v4 = vld [vmem:[#allocation7 + $0x38] sm:$0xff] }
 0xac4   : > { %3009 = vpow2.f32 %v2106_v33  ;;  %v289_v33 = vpack.c.bf16 %v285_v4, %v284_v42 }
 0xac6   : > { %v3008_v49 = vpop.eup %3007 }
 0xac7   : > { %v2110_v11 = vsel %vm565_vm5, %v3008_v49, 0.0 }
 0xace   : > { %v3010_v12 = vpop.eup %3009 }
 0xacf   : > { %v2116_v17 = vsel %vm565_vm5, %v3010_v12, 0.0 }
 0xaf9   : > { %v1972_v5 = vpop.f32.mrb[52].mxu1 }
 0xafa   : > { %v2079_v43 = vmul.f32 0.125, %v1972_v5  ;;  %v2819_v6 = vpop.f32.mrb[53].mxu1 }
 0xafb   : > { %v1975_v39 = vpop.f32.mrb[54].mxu1 }
 0xafc   : > { %v2820_v7 = vpop.f32.mrb[55].mxu1  ;;  %v2083_v30 = vadd.f32 %v2079_v43, %v3483_v61 }
 0xafe   : > { %v2089_v48 = vsel %vm565_vm5, %v2083_v30, -inf }
 0xaff   : > { %2090 = vmax.xlane.f32.xlu1 %v2089_v48 }
 0xb01   : > { %v2072_v8 = vpop.f32.mrb[56].mxu1 }
 0xb02   : > { %v2081_v9 = vmul.f32 0.125, %v2072_v8  ;;  %v2831_v10 = vpop.f32.mrb[57].mxu1 }
 0xb03   : > { %v2075_v13 = vpop.f32.mrb[58].mxu1  ;;  %2111 = vadd.xlane.f32.xlu1 %v2110_v11 }
 0xb04   : > { %v2832_v14 = vpop.f32.mrb[59].mxu1  ;;  %v2085_v15 = vadd.f32 %v2081_v9, %v3483_v61  ;;  %v2563_v9 = vld [vmem:[%s3821_s3] ss:$0 sm:$0xff] }
 0xb06   : > { %v2095_v16 = vsel %vm565_vm5, %v2085_v15, -inf }
 0xb07   : > { %2096 = vmax.xlane.f32.xlu0 %v2095_v16  ;;  %2117 = vadd.xlane.f32.xlu1 %v2116_v17 }
 0xb18   : > { %2134 = vrot.lane.b32.xlu1 %v3467_v53, %s3198_s9 }
 0xb1c   : > { %2230 = vrot.lane.b32.xlu1 %v3511_v57, %s3198_s9 }
 0xb20   : > { %2278 = vrot.lane.b32.xlu1 %v3521_v63, %s3198_s9 }
 0xb8c   : > { %v2091_v18 = vpop.xlane.xlu1 %2090 }
 0xb8d   : > { %v2099_v19 = vsub.f32 %v2083_v30, %v2091_v18 }
 0xb8f   : > { %v2104_v20 = vmul.f32 1.442695, %v2099_v19 }
 0xb90   : > { %v2112_v22 = vpop.xlane.xlu1 %2111 }
 0xb91   : > { %3011 = vpow2.f32 %v2104_v20 }
 0xb92   : > { %3013 = vrcp.f32 %v2112_v22 }
 0xb94   : > { %v2118_v61 = vpop.xlane.xlu1 %2117  ;;  %v2097_v23 = vpop.xlane.xlu0 %2096 }
 0xb95   : > { %v2101_v24 = vsub.f32 %v2085_v15, %v2097_v23  ;;  %3015 = vrcp.f32 %v2118_v61 }
 0xb97   : > { %v2108_v27 = vmul.f32 1.442695, %v2101_v24 }
 0xb98   : > { %v2135_v28 = vpop.permute.xlu1 %2134 }
 0xb99   : > { %3017 = vpow2.f32 %v2108_v27  ;;  %v2140_v53 = vsel %vm621_vm3, %v2135_v28, 0 }
 0xb9a   : > { %2834 = vmatpush3.bf16.msra.mxu0 %v2140_v53 }
 0xb9b   : > { %v3012_v57 = vpop.eup %3011  ;;  %2845 = vmatprep.subr.bf16.mxu0 %v3189_v31 }
 0xb9c   : > { %v3014_v63 = vpop.eup %3013  ;;  %v2113_v29 = vsel %vm565_vm5, %v3012_v57, 0.0  ;;  %v2231_v34 = vpop.permute.xlu1 %2230 }
 0xb9d   : > { %v2126_v32 = vmul.f32 %v3014_v63, %v3008_v49  ;;  %2114 = vadd.xlane.f32.xlu0 %v2113_v29  ;;  %v2236_v38 = vsel %vm621_vm3, %v2231_v34, 0 }
 0xb9f   : > { %v2130_v35 = vpack.c.bf16 %v2126_v32, %v2126_v32  ;;  %v3016_v36 = vpop.eup %3015 }
 0xba0   : > { %v2128_v44 = vmul.f32 %v3016_v36, %v3010_v12  ;;  %v2279_v58 = vpop.permute.xlu1 %2278 }
 0xba1   : > { %2836 = vmatmul.mubr.msk.bf16.vlgmr.msra.gmra.mrb[64].mxu0 %vm565_vm5, %v2130_v35  ;;  %v2284_v60 = vsel %vm621_vm3, %v2279_v58, 0 }
 0xba2   : > { %2846 = vmatpush3.bf16.msra.mxu0 %v2236_v38  ;;  %2847 = vmatprep.mubr.msk.bf16.mxu0 %vm3190_vm1, %v3189_v31  ;;  %v2132_v46 = vpack.c.bf16 %v2128_v44, %v2128_v44 }
 0xba3   : > { %v3018_v41 = vpop.eup %3017 }
 0xba4   : > { %v2119_v45 = vsel %vm565_vm5, %v3018_v41, 0.0 }
 0xba5   : > { %2120 = vadd.xlane.f32.xlu0 %v2119_v45 }
 0xba9   : > { %2848 = vmatmul.mubr.msk.bf16.vlgmr.msra.gmra.mrb[68].mxu0 %vm565_vm5, %v2132_v46 }
 0xbbb   : > { %2182 = vrot.lane.b32.xlu0 %v3460_v52, %s3198_s9 }
 0xc2a   : > { %v2115_v47 = vpop.xlane.xlu0 %2114 }
 0xc2b   : > { %3019 = vrcp.f32 %v2115_v47 }
 0xc32   : > { %v2121_v50 = vpop.xlane.xlu0 %2120 }
 0xc33   : > { %3021 = vrcp.f32 %v2121_v50 }
 0xc35   : > { %v3020_v51 = vpop.eup %3019 }
 0xc36   : > { %v2127_v54 = vmul.f32 %v3020_v51, %v3012_v57  ;;  %v2183_v55 = vpop.permute.xlu0 %2182 }
 0xc37   : > { %v2188_v56 = vsel %vm621_vm3, %v2183_v55, 0 }
 0xc38   : > { %2840 = vmatpush3.bf16.msra.mxu1 %v2188_v56  ;;  %v2131_v59 = vpack.c.bf16 %v2127_v54, %v2127_v54 }
 0xc39   : > { %2851 = vmatprep.subr.bf16.mxu1 %v3189_v31 }
 0xc3b   : > { %2842 = vmatmul.mubr.msk.bf16.vlgmr.msra.gmra.mrb[60].mxu1 %vm565_vm5, %v2131_v59 }
 0xc3c   : > { %2852 = vmatpush3.bf16.msra.mxu1 %v2284_v60  ;;  %2853 = vmatprep.mubr.msk.bf16.mxu1 %vm3190_vm1, %v3189_v31 }
 0xc3d   : > { %v3022_v52 = vpop.eup %3021  ;;  %2857 = vmatprep.subr.bf16.mxu1 %v289_v33 }
 0xc3e   : > { %v2129_v62 = vmul.f32 %v3022_v52, %v3018_v41 }
 0xc40   : > { %v2133_v40 = vpack.c.bf16 %v2129_v62, %v2129_v62 }
 0xc43   : > { %2854 = vmatmul.mubr.msk.bf16.vlgmr.msra.gmra.mrb[64].mxu1 %vm565_vm5, %v2133_v40 }
 0xc44   : > { %2858 = vmatpush3.bf16.msra.mxu1 %v289_v33 }
 0xc74   : > { %v2176_v0 = vpop.f32.mrb[64].mxu0 }
 0xc75   : > { %v2837_v37 = vpop.f32.mrb[65].mxu0 }
 0xc76   : > { %v2179_v1 = vpop.f32.mrb[66].mxu0 }
 0xc77   : > { %v2838_v2 = vpop.f32.mrb[67].mxu0 }
 0xc7c   : > { %v2272_v3 = vpop.f32.mrb[68].mxu0 }
 0xc7d   : > { %v2849_v21 = vpop.f32.mrb[69].mxu0 }
 0xc7e   : > { %v2275_v25 = vpop.f32.mrb[70].mxu0 }
 0xc7f   : > { %v2850_v26 = vpop.f32.mrb[71].mxu0 }
 0xd0e   : > { %v2224_v31 = vpop.f32.mrb[60].mxu1 }
 0xd0f   : > { %v2326_v5 = vpack.c.bf16 %v2224_v31, %v2176_v0  ;;  %v2843_v43 = vpop.f32.mrb[61].mxu1 }
 0xd10   : > { %v2227_v6 = vpop.f32.mrb[62].mxu1 }
 0xd11   : > { %v2844_v39 = vpop.f32.mrb[63].mxu1  ;;  %2859 = vmatprep.mubr.msk.bf16.mxu1 %vm363_vm2, %v2326_v5 }
 0xd16   : > { %v2320_v7 = vpop.f32.mrb[64].mxu1 }
 0xd17   : > { %v2327_v30 = vpack.c.bf16 %v2320_v7, %v2272_v3  ;;  %v2855_v48 = vpop.f32.mrb[65].mxu1 }
 0xd18   : > { %v2323_v49 = vpop.f32.mrb[66].mxu1 }
 0xd19   : > { %v2856_v8 = vpop.f32.mrb[67].mxu1  ;;  %2860 = vmatmul.mubr.msk.bf16.vlgmr.msra.gmra.mrb[36].mxu1 %vm363_vm2, %v2327_v30 }
 0xdec   : > { %v2861_v10 = vpop.f32.mrb[36].mxu1 }
 0xded   : > { %v2396_v11 = vadd.f32 %v2861_v10, %v2563_v9  ;;  %v2368_v12 = vpop.f32.mrb[37].mxu1 }
 0xdee   : > { %v2394_v13 = vadd.f32 %v2563_v9, %v2368_v12  ;;  %v2862_v14 = vpop.f32.mrb[38].mxu1 }
 0xdef   : > { %2400 = vst.msk [vmem:[%s244_s20 + $0x10] sm:$0xff] %vm290_vm0, %v2396_v11  ;;  %v2397_v15 = vadd.f32 %v2862_v14, %v2563_v9  ;;  %v2371_v16 = vpop.f32.mrb[39].mxu1 }
 0xdf0   : > { %2398 = vst.msk [vmem:[%s244_s20] sm:$0xff] %vm290_vm0, %v2394_v13  ;;  %v2395_v17 = vadd.f32 %v2563_v9, %v2371_v16 }
 0xdf1   : > { %2401 = vst.msk [vmem:[%s244_s20 + $0x18] sm:$0xff] %vm290_vm0, %v2397_v15 }
 0xdf2   : > { %2399 = vst.msk [vmem:[%s244_s20 + $0x8] sm:$0xff] %vm290_vm0, %v2395_v17 }
 0xdf3   : > { %3122 = shalt.err (!%p3119_p2)
}
 0xdf4   : > { %s3123_s8 = scalar_lea.hbm %s3771_s24, 512  ;;  %s3127_s9 = scalar_lea.hbm %s3822_s4, 1024 }
 0xdf5   : > { %p3124_p13 = scmp.ne.s32.totalorder %s3771_s24, %s3123_s8  ;;  %p3128_p4 = scmp.lt.u32.totalorder %s3771_s24, %s3822_s4 }
 0xdf6   : > { %p3129_p7 = scmp.lt.u32.totalorder %s3127_s9, %s3123_s8  ;;  %p3131_p11 = scmp.lt.u32.totalorder %s3123_s8, %s3771_s24 }
 0xdf7   : > { %p3125_p6 = pnand %p3124_p13, %p3836_p0 }
 0xdf8   : > { %p3130_p8 = por %p3129_p7, %p3128_p4 }
 0xdf9   : > { %p3126_p10 = pneg %p3125_p6 }
 0xdfa   : > { %p3132_p1 = por %p3131_p11, %p3130_p8 }
 0xdfc   : > { %p3133_p3 = pnand %p3132_p1, %p3126_p10 }
 0xdfe   : > { %3136 = shalt.err (!%p3133_p3)
}
 0xdff   : > { %s3200_s20 = smov 128   ;;  %s3201_s5 = smov 8  }
 0xe00   : > { %2885 = dma.vmem_to_hbm [thread:$0]  (%p3836_p0), %s3765_s29, 512, %s3771_s24, %s2403_s19, %s3200_s20, %s3200_s20, %s3201_s5  }
 0xe01 PF: > { %s2431_s12 = sand.u32 1, %s3167_s15   ;;  %p3837_p5 = scmp.ne.s32.totalorder %s3827_s22, 0 }
 0xe02   : > { %p3838_p9 = scmp.ge.s32.totalorder %s3179_s18, 2  ;;  %s2432_s13 = scalar_lea.sflag [#allocation4], %s2431_s12 }
 0xe04   : > { %p2899_p12 = pnand %p3838_p9, %p3837_p5 }
 0xe06   : > { %3162 = dma.done.wait (!%p2899_p12), %s2432_s13, 512  }
 0xe07   : > { %3164 = vsyncadd (!%p2899_p12), %s2432_s13, 4294966784  ;;  %p18_p2 = scmp.ge.s32.totalorder %s3340_s11, 4   ;;  %s3839_s15 = smov %s3171_s16 }
 0xe08   : > { %s3840_s16 = smov %s3175_s17  ;;  %s3841_s17 = smov %s3349_s14 }
 0xe09   : > { %s3842_s18 = smov %s3340_s11  ;;  %20 = sbr.rel (!%p18_p2) target bundleno = 6 (0x6), region = 89 }
 0xe10   :  { %2437 = vsyncpa [#allocation3], 1 }
 0xe11   :  { %2439 = vsyncpa [#allocation3 + $0x1], 1 }
 0xe12   :  { %2440 = vsyncpa [#allocation6], 1 }
 0xe13   :  { %2441 = vsyncpa [#allocation4], 1 }
 0xe14   :  { %2443 = vsyncpa [#allocation4 + $0x1], 1 }

</bundles_post_ra>
